<compile_context>
chip_gen: v6e
topology: v6e:2x2x1
jax: 0.10.0
libtpu: 0.0.40
codegen_flags: <defaults>
</compile_context>

<pallas_src>
import jax
import jax.numpy as jnp
from jax.experimental import pallas as pl
from jax.experimental.pallas import tpu as pltpu


def _make_se_kernel(inv_hw):
    """Build the SE kernel with the (static) 1/HW pooling factor baked in."""

    def se_kernel(x_ref, w1_ref, w2_ref, o_ref):
        # x_ref: (BT, C, HW) block
        # w1_ref: (C, Cr)   -- pre-transposed from PyTorch (out, in) layout
        # w2_ref: (Cr, C)
        x = x_ref[...]                                            # native dtype
        # Global average pool: accumulate in f32, divide by HW.
        y = jnp.sum(x, axis=-1, dtype=jnp.float32) * inv_hw       # (BT, C)
        # Gate MLP, batched over the BT rows of this block.
        h = jnp.dot(y, w1_ref[...], preferred_element_type=jnp.float32)   # (BT, Cr)
        h = jnp.maximum(h, 0.0)                                   # ReLU
        s = jnp.dot(h, w2_ref[...], preferred_element_type=jnp.float32)   # (BT, C)
        s = jax.nn.sigmoid(s)                                     # f32 gate
        # Scale channels in f32 (bf16 x * f32 s promotes to f32), matching the
        # reference; for f32 inputs this is a no-op cast.
        o_ref[...] = (x * s[:, :, None]).astype(o_ref.dtype)

    return se_kernel


def _default_block_bytes():
    """Per-generation block-size target (review: 2 MiB v5e, 4 MiB v6e, 6 MiB v7x)."""
    try:
        kind = jax.devices()[0].device_kind.lower()
    except Exception:
        return 4 << 20
    if "v5 lite" in kind or "v5e" in kind or "v5lite" in kind:
        return 2 << 20
    if "v6" in kind:
        return 4 << 20
    if "v7" in kind:
        return 6 << 20
    return 4 << 20   # conservative default for other generations


def se_layer(x, w1, w2, *, target_block_bytes=None):
    """x: (B, C, H, W) NCHW.  w1: (C, C//r), w2: (C//r, C)."""
    B, C, H, W = x.shape
    HW = H * W
    Cr = w1.shape[1]

    if target_block_bytes is None:
        target_block_bytes = _default_block_bytes()

    # No spatial padding: the block's last dim is the full HW extent, so the
    # (8,128) divisibility rule does not apply and we skip the extra HBM
    # pad/slice passes.  Small HW just means masked (vst.msk) stores.
    x3 = x.reshape(B, C, HW)

    # Pick a batch tile BT targeting ~target_block_bytes per block.  In+out,
    # each double-buffered, is ~4x the block; the per-generation targets keep
    # that under half the scoped-VMEM defaults (16/32/32 MiB), so no
    # vmem_limit_bytes override is needed.
    itemsize = jnp.dtype(x.dtype).itemsize
    per_batch_bytes = C * HW * itemsize
    min_block_bytes = 1 << 20   # don't shrink blocks below ~1 MiB for megacore

    bt = max(1, int(target_block_bytes // per_batch_bytes))
    bt = min(bt, B)

    # Megacore: prefer >=2 grid steps only if blocks stay >= ~1 MiB; otherwise
    # keep one big block (per-step overhead dominates tiny blocks).
    if bt >= B and B >= 2:
        bt_half = (B + 1) // 2
        if bt_half * per_batch_bytes >= min_block_bytes:
            bt = bt_half

    # v7x: prefer an even grid-step count so both TensorCores get equal work,
    # but never at the cost of sub-1MiB blocks.
    steps = -(-B // bt)
    if steps > 2 and steps % 2 == 1:
        bt_alt = -(-B // (steps + 1))
        if bt_alt >= 1 and bt_alt * per_batch_bytes >= min_block_bytes:
            bt = bt_alt

    # Awkward batch sizes: pad B up to a multiple of bt (zero rows -> zero
    # outputs, sliced off below) instead of collapsing to bt=1.
    n_blocks = -(-B // bt)
    B_pad = n_blocks * bt
    if B_pad != B:
        x3 = jnp.pad(x3, ((0, B_pad - B), (0, 0), (0, 0)))

    # TODO(synk): for very large C*HW (single-batch block > ~8 MiB) switch to a
    # two-pass pool-kernel + HW-tiled scale-kernel to respect v7x's 64 MiB VMEM.

    kernel = _make_se_kernel(1.0 / HW)
    out = pl.pallas_call(
        kernel,
        out_shape=jax.ShapeDtypeStruct((B_pad, C, HW), x.dtype),
        grid_spec=pltpu.PrefetchScalarGridSpec(
            num_scalar_prefetch=0,
            grid=(n_blocks,),
            in_specs=[
                pl.BlockSpec((bt, C, HW), lambda b: (b, 0, 0)),
                pl.BlockSpec((C, Cr), lambda b: (0, 0)),
                pl.BlockSpec((Cr, C), lambda b: (0, 0)),
            ],
            out_specs=pl.BlockSpec((bt, C, HW), lambda b: (b, 0, 0)),
        ),
        compiler_params=pltpu.CompilerParams(
            dimension_semantics=("parallel",)),
    )(x3, w1, w2)

    if B_pad != B:
        out = out[:B]
    return out.reshape(B, C, H, W)


def se_layer_ref(x, w1, w2):
    # Pure-JAX reference mirroring the PyTorch forward.
    y = jnp.mean(x, axis=(2, 3))                 # (B, C) AdaptiveAvgPool2d(1)
    h = jnp.maximum(y @ w1, 0.0)                 # Linear(C -> C//r) + ReLU
    s = jax.nn.sigmoid(h @ w2)                   # Linear(C//r -> C) + Sigmoid
    return x * s[:, :, None, None]


if __name__ == "__main__":
    key = jax.random.PRNGKey(0)
    k_x1, k_x2, k_x3, k_w1, k_w2 = jax.random.split(key, 5)

    # Shapes consistent with the module: channel=64, reduction=16 -> hidden=4.
    C = 64
    reduction = 16
    Cr = C // reduction

    # PyTorch nn.Linear weights have shape (out_features, in_features); init
    # deterministically and pre-transpose so the kernel does y @ W.
    w1_pt = jax.random.normal(k_w1, (Cr, C), dtype=jnp.float32) * (1.0 / jnp.sqrt(C))
    w2_pt = jax.random.normal(k_w2, (C, Cr), dtype=jnp.float32) * (1.0 / jnp.sqrt(Cr))
    w1 = w1_pt.T   # (C, Cr)
    w2 = w2_pt.T   # (Cr, C)

    # Case 1: lane-aligned spatial size (B=8 stays a single ~512 KiB block).
    B1, H1, W1 = 8, 16, 16
    x1 = jax.random.normal(k_x1, (B1, C, H1, W1), dtype=jnp.float32)
    out1 = jax.block_until_ready(se_layer(x1, w1, w2))
    ref1 = se_layer_ref(x1, w1, w2)
    assert out1.shape == (B1, C, H1, W1)
    assert jnp.allclose(out1, ref1, atol=1e-5, rtol=1e-5), "mismatch vs reference (16x16)"

    # Case 2: non-multiple-of-128 spatial size (7x7=49 lanes, no HBM padding).
    B2, H2, W2 = 2, 7, 7
    x2 = jax.random.normal(k_x2, (B2, C, H2, W2), dtype=jnp.float32)
    out2 = jax.block_until_ready(se_layer(x2, w1, w2))
    ref2 = se_layer_ref(x2, w1, w2)
    assert out2.shape == (B2, C, H2, W2)
    assert jnp.allclose(out2, ref2, atol=1e-5, rtol=1e-5), "mismatch vs reference (7x7)"

    # Case 3: awkward (prime) batch size exercising the batch-padding path and
    # a small block target so the grid has >1 step.
    B3, H3, W3 = 5, 14, 14
    x3 = jax.random.normal(k_x3, (B3, C, H3, W3), dtype=jnp.float32)
    out3 = jax.block_until_ready(se_layer(x3, w1, w2, target_block_bytes=128 << 10))
    ref3 = se_layer_ref(x3, w1, w2)
    assert out3.shape == (B3, C, H3, W3)
    assert jnp.allclose(out3, ref3, atol=1e-5, rtol=1e-5), "mismatch vs reference (14x14, B=5)"

    print("KERNEL_OK")
</pallas_src>

<mosaic_0001>
module attributes {stable_mosaic.version = 11 : i64} {
  func.func @se_kernel(%arg0: i32, %arg1: memref<8x64x256xf32, #tpu.memory_space<vmem>>, %arg2: memref<64x4xf32, #tpu.memory_space<vmem>>, %arg3: memref<4x64xf32, #tpu.memory_space<vmem>>, %arg4: memref<8x64x256xf32, #tpu.memory_space<vmem>>) attributes {dimension_semantics = [#tpu.dimension_semantics<parallel>], iteration_bounds = array<i64: 1>, scalar_prefetch = 0 : i64, scratch_operands = 0 : i64, tpu.core_type = #tpu.core_type<tc>, window_params = [{transform_indices = @transform_0, window_bounds = array<i64: 8, 64, 256>}, {pipeline_mode = #tpu.pipeline_mode<synchronous>, transform_indices = @transform_1, window_bounds = array<i64: 64, 4>}, {pipeline_mode = #tpu.pipeline_mode<synchronous>, transform_indices = @transform_2, window_bounds = array<i64: 4, 64>}, {transform_indices = @transform_3, window_bounds = array<i64: 8, 64, 256>}]} {
    %c0 = arith.constant 0 : index
    %c0_0 = arith.constant 0 : index
    %c0_1 = arith.constant 0 : index
    %0 = vector.load %arg1[%c0, %c0_0, %c0_1] : memref<8x64x256xf32, #tpu.memory_space<vmem>>, vector<8x64x256xf32>
    %cst = arith.constant dense<0.000000e+00> : vector<8x64xf32>
    %1 = vector.multi_reduction <add>, %0, %cst [2] : vector<8x64x256xf32> to vector<8x64xf32>
    %cst_2 = arith.constant 3.906250e-03 : f32
    %2 = vector.broadcast %cst_2 : f32 to vector<8x64xf32>
    %3 = arith.mulf %1, %2 : vector<8x64xf32>
    %c0_3 = arith.constant 0 : index
    %c0_4 = arith.constant 0 : index
    %4 = vector.load %arg2[%c0_3, %c0_4] : memref<64x4xf32, #tpu.memory_space<vmem>>, vector<64x4xf32>
    %cst_5 = arith.constant dense<0.000000e+00> : vector<8x4xf32>
    %5 = tpu.matmul %3, %4, %cst_5 {dimension_numbers = #tpu.dot_dimension_numbers<[1], [0], [0], [1], [0, 0, 1, 1], [], []>} : vector<8x64xf32>, vector<64x4xf32>, vector<8x4xf32> -> vector<8x4xf32>
    %cst_6 = arith.constant 0.000000e+00 : f32
    %6 = vector.broadcast %cst_6 : f32 to vector<8x4xf32>
    %7 = arith.maximumf %5, %6 : vector<8x4xf32>
    %c0_7 = arith.constant 0 : index
    %c0_8 = arith.constant 0 : index
    %8 = vector.load %arg3[%c0_7, %c0_8] : memref<4x64xf32, #tpu.memory_space<vmem>>, vector<4x64xf32>
    %cst_9 = arith.constant dense<0.000000e+00> : vector<8x64xf32>
    %9 = tpu.matmul %7, %8, %cst_9 {dimension_numbers = #tpu.dot_dimension_numbers<[1], [0], [0], [1], [0, 0, 1, 1], [], []>} : vector<8x4xf32>, vector<4x64xf32>, vector<8x64xf32> -> vector<8x64xf32>
    %10 = arith.negf %9 : vector<8x64xf32>
    %11 = math.exp %10 : vector<8x64xf32>
    %cst_10 = arith.constant 1.000000e+00 : f32
    %12 = vector.broadcast %cst_10 : f32 to vector<8x64xf32>
    %13 = arith.addf %12, %11 : vector<8x64xf32>
    %14 = arith.divf %12, %13 : vector<8x64xf32>
    %15 = vector.shape_cast %14 : vector<8x64xf32> to vector<8x64x1xf32>
    %16 = vector.broadcast %15 : vector<8x64x1xf32> to vector<8x64x256xf32>
    %17 = arith.mulf %0, %16 : vector<8x64x256xf32>
    %c0_11 = arith.constant 0 : index
    %c0_12 = arith.constant 0 : index
    %c0_13 = arith.constant 0 : index
    %18 = vector.load %arg4[%c0_11, %c0_12, %c0_13] : memref<8x64x256xf32, #tpu.memory_space<vmem>>, vector<8x64x256xf32>
    tpu.vector_store %arg4[%c0_11, %c0_12, %c0_13], %17 {strides = array<i32>} : memref<8x64x256xf32, #tpu.memory_space<vmem>>, vector<8x64x256xf32>,
    return
  }
  func.func @transform_0(%arg0: i32) -> (i32, i32, i32) {
    %c0_i32 = arith.constant 0 : i32
    %c0_i32_0 = arith.constant 0 : i32
    %c0_i32_1 = arith.constant 0 : i32
    return %arg0, %c0_i32, %c0_i32_0 : i32, i32, i32
  }
  func.func @transform_1(%arg0: i32) -> (i32, i32) {
    %c0_i32 = arith.constant 0 : i32
    %c0_i32_0 = arith.constant 0 : i32
    %c0_i32_1 = arith.constant 0 : i32
    return %c0_i32, %c0_i32_0 : i32, i32
  }
  func.func @transform_2(%arg0: i32) -> (i32, i32) {
    %c0_i32 = arith.constant 0 : i32
    %c0_i32_0 = arith.constant 0 : i32
    %c0_i32_1 = arith.constant 0 : i32
    return %c0_i32, %c0_i32_0 : i32, i32
  }
  func.func @transform_3(%arg0: i32) -> (i32, i32, i32) {
    %c0_i32 = arith.constant 0 : i32
    %c0_i32_0 = arith.constant 0 : i32
    %c0_i32_1 = arith.constant 0 : i32
    return %arg0, %c0_i32, %c0_i32_0 : i32, i32, i32
  }
}

</mosaic_0001>

<bundles_post_ra>
// kernel: tpu_custom_call.1
= control target key start
LH: loop header
LB: loop body
LE: loop exit
PB: predicated region body
PF: predicated region fallthrough
CT: control target
= control target key end

     0   :  { %8 = vsyncpa [#allocation3], 0  ;;  %s2124_s0 = inlined_call_operand.hbm [shape: f32[8,64,256], index: 0, kind: input, shape index: {}]   ;;  %s2125_s1 = inlined_call_operand.vmem [shape: f32[64,4], index: 1, kind: input, shape index: {}]   ;;  %s2126_s2 = inlined_call_operand.vmem [shape: f32[4,64], index: 2, kind: input, shape index: {}]   ;;  %s2127_s3 = inlined_call_operand.hbm [shape: f32[8,64,256], index: 3, kind: output, shape index: {}]  }
   0x1   :  { %9 = vsyncpa [#allocation4], 0  ;;  %s1760_s12 = smov [#allocation2]  }
   0x2   :  { %s15_s13 = sshll.u32 %s1760_s12, 4  ;;  %s16_s13 = int_to_ptr.vmem [resolvable:$true] %s15_s13 }
   0x3   :  { %s1724_s14 = scalar_lea.vmem %s16_s13, 16384  ;;  %p1729_p1 = scmp.lt.s32.totalorder %s16_s13, %s16_s13 }
   0x4   :  { %p1725_p0 = scmp.ne.s32.totalorder %s16_s13, %s1724_s14  ;;  %p1730_p2 = scmp.lt.s32.totalorder %s1724_s14, %s1724_s14 }
   0x6   :  { %p1731_p3 = por %p1730_p2, %p1729_p1 }
   0x8   :  { %p1732_p4 = pnand %p1731_p3, %p1725_p0 }
   0xa   :  { %1735 = shalt.err (!%p1732_p4)
}
   0xb   :  { %s1761_s15 = smov 256   ;;  %s1762_s16 = smov 16  }
   0xc   :  { %21 = dma.hbm_to_vmem [thread:$0]  %s2124_s0, 16384, %s16_s13, [#allocation3], %s1761_s15, %s1761_s15, %s1762_s16  }
   0xd   :  { %1756 = dma.done.wait [#allocation3], 16384  }
   0xe   :  { %1757 = vsyncadd [#allocation3], 4294950912  ;;  %v45_v0 = vld [vmem:[#allocation2 + $0x80] sm:$0xff]  ;;  %v46_v1 = vld [vmem:[#allocation2 + $0x88] sm:$0xff]  ;;  %vm1764_vm0 = vmmov 0   ;;  %vm496_vm1 = vcmask 130112  }
   0xf   :  { %v29_v2 = vld [vmem:[#allocation2] sm:$0xff]  ;;  %v181_v3 = vadd.f32 %v46_v1, %v45_v0  ;;  %v30_v4 = vld [vmem:[#allocation2 + $0x8] sm:$0xff]  ;;  %v47_v5 = vld [vmem:[#allocation2 + $0x90] sm:$0xff]  ;;  %vm503_vm2 = vcmask 195712   ;;  %vm510_vm3 = vcmask 261312   ;;  %vm517_vm4 = vcmask 326912  }
  0x10   :  { %v48_v6 = vld [vmem:[#allocation2 + $0x98] sm:$0xff]  ;;  %v157_v7 = vadd.f32 %v30_v4, %v29_v2  ;;  %v31_v8 = vld [vmem:[#allocation2 + $0x10] sm:$0xff]  ;;  %v49_v12 = vld [vmem:[#allocation2 + $0xa0] sm:$0xff]  ;;  %vm524_vm5 = vcmask 392512   ;;  %vm531_vm6 = vcmask 458112   ;;  %vm538_vm7 = vcmask 523712  }
  0x11   :  { %v32_v9 = vld [vmem:[#allocation2 + $0x18] sm:$0xff]  ;;  %182 = vadd.xlane.f32.xlu1 %v181_v3  ;;  %v184_v10 = vadd.f32 %v48_v6, %v47_v5  ;;  %v50_v13 = vld [vmem:[#allocation2 + $0xa8] sm:$0xff]  ;;  %v33_v14 = vld [vmem:[#allocation2 + $0x20] sm:$0xff]  ;;  %vm813_vm8 = vcmask 1041409   ;;  %vm815_vm9 = vcmask 1042434   ;;  %vm817_vm10 = vcmask 1043459  }
  0x12   :  { %158 = vadd.xlane.f32.xlu0 %v157_v7  ;;  %v160_v11 = vadd.f32 %v32_v9, %v31_v8  ;;  %v34_v15 = vld [vmem:[#allocation2 + $0x28] sm:$0xff]  ;;  %v187_v16 = vadd.f32 %v50_v13, %v49_v12  ;;  %v63_v18 = vld [vmem:[#allocation2 + $0x110] sm:$0xff]  ;;  %v64_v19 = vld [vmem:[#allocation2 + $0x118] sm:$0xff]  ;;  %vm819_vm11 = vcmask 1044484   ;;  %vm821_vm12 = vcmask 1045509  }
  0x13   :  { %v163_v17 = vadd.f32 %v34_v15, %v33_v14  ;;  %v61_v20 = vld [vmem:[#allocation2 + $0x100] sm:$0xff]  ;;  %v62_v21 = vld [vmem:[#allocation2 + $0x108] sm:$0xff]  ;;  %v208_v22 = vadd.f32 %v64_v19, %v63_v18  ;;  %v51_v24 = vld [vmem:[#allocation2 + $0xb0] sm:$0xff]  ;;  %vm823_vm13 = vcmask 1046534   ;;  %vm825_vm14 = vcmask 1047559  }
  0x14   :  { %v205_v23 = vadd.f32 %v62_v21, %v61_v20  ;;  %v52_v25 = vld [vmem:[#allocation2 + $0xb8] sm:$0xff]  ;;  %v35_v26 = vld [vmem:[#allocation2 + $0x30] sm:$0xff]  ;;  %v77_v30 = vld [vmem:[#allocation2 + $0x180] sm:$0xff]  ;;  %vm827_vm15 = vcmask 523264  }
  0x15   :  { %185 = vadd.xlane.f32.xlu1 %v184_v10  ;;  %v36_v27 = vld [vmem:[#allocation2 + $0x38] sm:$0xff]  ;;  %v190_v28 = vadd.f32 %v52_v25, %v51_v24  ;;  %v78_v31 = vld [vmem:[#allocation2 + $0x188] sm:$0xff]  ;;  %v65_v32 = vld [vmem:[#allocation2 + $0x120] sm:$0xff] }
  0x16   :  { %161 = vadd.xlane.f32.xlu0 %v160_v11  ;;  %v166_v29 = vadd.f32 %v36_v27, %v35_v26  ;;  %v66_v33 = vld [vmem:[#allocation2 + $0x128] sm:$0xff]  ;;  %v229_v34 = vadd.f32 %v78_v31, %v77_v30  ;;  %v37_v36 = vld [vmem:[#allocation2 + $0x40] sm:$0xff]  ;;  %v79_v38 = vld [vmem:[#allocation2 + $0x190] sm:$0xff] }
  0x17   :  { %v211_v35 = vadd.f32 %v66_v33, %v65_v32  ;;  %v38_v37 = vld [vmem:[#allocation2 + $0x48] sm:$0xff]  ;;  %v80_v39 = vld [vmem:[#allocation2 + $0x198] sm:$0xff]  ;;  %v67_v42 = vld [vmem:[#allocation2 + $0x130] sm:$0xff] }
  0x18   :  { %v169_v40 = vadd.f32 %v38_v37, %v37_v36  ;;  %v232_v41 = vadd.f32 %v80_v39, %v79_v38  ;;  %v68_v43 = vld [vmem:[#allocation2 + $0x138] sm:$0xff]  ;;  %v53_v44 = vld [vmem:[#allocation2 + $0xc0] sm:$0xff]  ;;  %v54_v45 = vld [vmem:[#allocation2 + $0xc8] sm:$0xff] }
  0x19   :  { %188 = vadd.xlane.f32.xlu1 %v187_v16  ;;  %v214_v46 = vadd.f32 %v68_v43, %v67_v42  ;;  %v193_v47 = vadd.f32 %v54_v45, %v53_v44  ;;  %v93_v48 = vld [vmem:[#allocation2 + $0x200] sm:$0xff]  ;;  %v94_v49 = vld [vmem:[#allocation2 + $0x208] sm:$0xff]  ;;  %v39_v54 = vld [vmem:[#allocation2 + $0x50] sm:$0xff] }
  0x1a   :  { %164 = vadd.xlane.f32.xlu0 %v163_v17  ;;  %v81_v50 = vld [vmem:[#allocation2 + $0x1a0] sm:$0xff]  ;;  %v82_v51 = vld [vmem:[#allocation2 + $0x1a8] sm:$0xff]  ;;  %v253_v52 = vadd.f32 %v94_v49, %v93_v48  ;;  %v40_v55 = vld [vmem:[#allocation2 + $0x58] sm:$0xff] }
  0x1b   :  { %v235_v53 = vadd.f32 %v82_v51, %v81_v50  ;;  %v95_v56 = vld [vmem:[#allocation2 + $0x210] sm:$0xff]  ;;  %v96_v57 = vld [vmem:[#allocation2 + $0x218] sm:$0xff]  ;;  %v172_v58 = vadd.f32 %v40_v55, %v39_v54  ;;  %v69_v60 = vld [vmem:[#allocation2 + $0x140] sm:$0xff] }
  0x1c   :  { %v256_v59 = vadd.f32 %v96_v57, %v95_v56  ;;  %v70_v61 = vld [vmem:[#allocation2 + $0x148] sm:$0xff]  ;;  %v55_v62 = vld [vmem:[#allocation2 + $0xd0] sm:$0xff]  ;;  %v56_v63 = vld [vmem:[#allocation2 + $0xd8] sm:$0xff] }
  0x1d   :  { %209 = vadd.xlane.f32.xlu1 %v208_v22  ;;  %v217_v0 = vadd.f32 %v70_v61, %v69_v60  ;;  %v196_v1 = vadd.f32 %v56_v63, %v55_v62  ;;  %v97_v2 = vld [vmem:[#allocation2 + $0x220] sm:$0xff]  ;;  %v98_v3 = vld [vmem:[#allocation2 + $0x228] sm:$0xff]  ;;  %v83_v4 = vld [vmem:[#allocation2 + $0x1b0] sm:$0xff] }
  0x1e   :  { %206 = vadd.xlane.f32.xlu0 %v205_v23  ;;  %v84_v5 = vld [vmem:[#allocation2 + $0x1b8] sm:$0xff]  ;;  %v259_v6 = vadd.f32 %v98_v3, %v97_v2  ;;  %v111_v8 = vld [vmem:[#allocation2 + $0x290] sm:$0xff]  ;;  %v109_v10 = vld [vmem:[#allocation2 + $0x280] sm:$0xff] }
  0x1f   :  { %v238_v7 = vadd.f32 %v84_v5, %v83_v4  ;;  %v112_v9 = vld [vmem:[#allocation2 + $0x298] sm:$0xff]  ;;  %v110_v11 = vld [vmem:[#allocation2 + $0x288] sm:$0xff]  ;;  %v57_v14 = vld [vmem:[#allocation2 + $0xe0] sm:$0xff] }
  0x20   :  { %v280_v12 = vadd.f32 %v112_v9, %v111_v8  ;;  %v277_v13 = vadd.f32 %v110_v11, %v109_v10  ;;  %v58_v15 = vld [vmem:[#allocation2 + $0xe8] sm:$0xff]  ;;  %v41_v16 = vld [vmem:[#allocation2 + $0x60] sm:$0xff]  ;;  %v71_v22 = vld [vmem:[#allocation2 + $0x150] sm:$0xff] }
  0x21   :  { %191 = vadd.xlane.f32.xlu1 %v190_v28  ;;  %v42_v17 = vld [vmem:[#allocation2 + $0x68] sm:$0xff]  ;;  %v199_v18 = vadd.f32 %v58_v15, %v57_v14  ;;  %v85_v20 = vld [vmem:[#allocation2 + $0x1c0] sm:$0xff]  ;;  %v72_v23 = vld [vmem:[#allocation2 + $0x158] sm:$0xff] }
  0x22   :  { %167 = vadd.xlane.f32.xlu0 %v166_v29  ;;  %v175_v19 = vadd.f32 %v42_v17, %v41_v16  ;;  %v86_v21 = vld [vmem:[#allocation2 + $0x1c8] sm:$0xff]  ;;  %v220_v25 = vadd.f32 %v72_v23, %v71_v22  ;;  %v113_v26 = vld [vmem:[#allocation2 + $0x2a0] sm:$0xff]  ;;  %v99_v28 = vld [vmem:[#allocation2 + $0x230] sm:$0xff] }
  0x23   :  { %v241_v24 = vadd.f32 %v86_v21, %v85_v20  ;;  %v114_v27 = vld [vmem:[#allocation2 + $0x2a8] sm:$0xff]  ;;  %v100_v29 = vld [vmem:[#allocation2 + $0x238] sm:$0xff]  ;;  %v127_v32 = vld [vmem:[#allocation2 + $0x310] sm:$0xff] }
  0x24   :  { %v283_v30 = vadd.f32 %v114_v27, %v113_v26  ;;  %v262_v31 = vadd.f32 %v100_v29, %v99_v28  ;;  %v128_v33 = vld [vmem:[#allocation2 + $0x318] sm:$0xff]  ;;  %v59_v38 = vld [vmem:[#allocation2 + $0xf0] sm:$0xff]  ;;  %v141_v56 = vld [vmem:[#allocation2 + $0x380] sm:$0xff] }
  0x25   :  { %230 = vadd.xlane.f32.xlu1 %v229_v34  ;;  %v125_v34 = vld [vmem:[#allocation2 + $0x300] sm:$0xff]  ;;  %v304_v36 = vadd.f32 %v128_v33, %v127_v32  ;;  %v60_v39 = vld [vmem:[#allocation2 + $0xf8] sm:$0xff]  ;;  %v87_v44 = vld [vmem:[#allocation2 + $0x1d0] sm:$0xff] }
  0x26   :  { %212 = vadd.xlane.f32.xlu0 %v211_v35  ;;  %v126_v35 = vld [vmem:[#allocation2 + $0x308] sm:$0xff]  ;;  %v202_v42 = vadd.f32 %v60_v39, %v59_v38  ;;  %v88_v45 = vld [vmem:[#allocation2 + $0x1d8] sm:$0xff]  ;;  %v115_v50 = vld [vmem:[#allocation2 + $0x2b0] sm:$0xff] }
  0x27   :  { %v301_v37 = vadd.f32 %v126_v35, %v125_v34  ;;  %v244_v48 = vadd.f32 %v88_v45, %v87_v44  ;;  %v116_v51 = vld [vmem:[#allocation2 + $0x2b8] sm:$0xff]  ;;  %v142_v57 = vld [vmem:[#allocation2 + $0x388] sm:$0xff]  ;;  %v75_v62 = vld [vmem:[#allocation2 + $0x170] sm:$0xff] }
  0x28   :  { %v286_v54 = vadd.f32 %v116_v51, %v115_v50  ;;  %v325_v60 = vadd.f32 %v142_v57, %v141_v56  ;;  %v76_v63 = vld [vmem:[#allocation2 + $0x178] sm:$0xff]  ;;  %v103_v4 = vld [vmem:[#allocation2 + $0x250] sm:$0xff]  ;;  %v121_v34 = vld [vmem:[#allocation2 + $0x2e0] sm:$0xff] }
  0x29   :  { %170 = vadd.xlane.f32.xlu1 %v169_v40  ;;  %v43_v40 = vld [vmem:[#allocation2 + $0x70] sm:$0xff]  ;;  %v226_v2 = vadd.f32 %v76_v63, %v75_v62  ;;  %v104_v5 = vld [vmem:[#allocation2 + $0x258] sm:$0xff]  ;;  %v122_v35 = vld [vmem:[#allocation2 + $0x2e8] sm:$0xff] }
  0x2a   :  { %233 = vadd.xlane.f32.xlu0 %v232_v41  ;;  %v44_v41 = vld [vmem:[#allocation2 + $0x78] sm:$0xff]  ;;  %v268_v8 = vadd.f32 %v104_v5, %v103_v4  ;;  %v131_v10 = vld [vmem:[#allocation2 + $0x330] sm:$0xff]  ;;  %v295_v38 = vadd.f32 %v122_v35, %v121_v34  ;;  %v417_v4 = vld [vmem:[%s2125_s1 + $0x20] sm:$0xff] }
  0x2b   :  { %v178_v43 = vadd.f32 %v44_v41, %v43_v40  ;;  %v132_v11 = vld [vmem:[#allocation2 + $0x338] sm:$0xff]  ;;  %v91_v16 = vld [vmem:[#allocation2 + $0x1f0] sm:$0xff]  ;;  %v149_v40 = vld [vmem:[#allocation2 + $0x3c0] sm:$0xff] }
  0x2c   :  { %v310_v14 = vadd.f32 %v132_v11, %v131_v10  ;;  %v92_v17 = vld [vmem:[#allocation2 + $0x1f8] sm:$0xff]  ;;  %v119_v22 = vld [vmem:[#allocation2 + $0x2d0] sm:$0xff]  ;;  %v150_v41 = vld [vmem:[#allocation2 + $0x3c8] sm:$0xff] }
  0x2d   :  { %215 = vadd.xlane.f32.xlu1 %v214_v46  ;;  %v73_v46 = vld [vmem:[#allocation2 + $0x160] sm:$0xff]  ;;  %v250_v20 = vadd.f32 %v92_v17, %v91_v16  ;;  %v120_v23 = vld [vmem:[#allocation2 + $0x2d8] sm:$0xff]  ;;  %v147_v28 = vld [vmem:[#allocation2 + $0x3b0] sm:$0xff]  ;;  %v337_v44 = vadd.f32 %v150_v41, %v149_v40 }
  0x2e   :  { %194 = vadd.xlane.f32.xlu0 %v193_v47  ;;  %v74_v47 = vld [vmem:[#allocation2 + $0x168] sm:$0xff]  ;;  %v292_v26 = vadd.f32 %v120_v23, %v119_v22  ;;  %v148_v29 = vld [vmem:[#allocation2 + $0x3b8] sm:$0xff]  ;;  %v413_v10 = vld [vmem:[%s2125_s1] sm:$0xff] }
  0x2f   :  { %v223_v49 = vadd.f32 %v74_v47, %v73_v46  ;;  %v334_v32 = vadd.f32 %v148_v29, %v147_v28  ;;  %v137_v46 = vld [vmem:[#allocation2 + $0x360] sm:$0xff]  ;;  %v138_v47 = vld [vmem:[#allocation2 + $0x368] sm:$0xff]  ;;  %v416_v5 = vld [vmem:[%s2125_s1 + $0x18] sm:$0xff] }
  0x30   :  { %v319_v50 = vadd.f32 %v138_v47, %v137_v46 }
  0x31   :  { %254 = vadd.xlane.f32.xlu1 %v253_v52  ;;  %v101_v52 = vld [vmem:[#allocation2 + $0x240] sm:$0xff] }
  0x32   :  { %236 = vadd.xlane.f32.xlu0 %v235_v53  ;;  %v102_v53 = vld [vmem:[#allocation2 + $0x248] sm:$0xff] }
  0x33   :  { %v265_v55 = vadd.f32 %v102_v53, %v101_v52  ;;  %v139_v52 = vld [vmem:[#allocation2 + $0x370] sm:$0xff]  ;;  %v140_v53 = vld [vmem:[#allocation2 + $0x378] sm:$0xff] }
  0x34   :  { %v322_v56 = vadd.f32 %v140_v53, %v139_v52 }
  0x35   :  { %173 = vadd.xlane.f32.xlu1 %v172_v58  ;;  %v129_v58 = vld [vmem:[#allocation2 + $0x320] sm:$0xff] }
  0x36   :  { %257 = vadd.xlane.f32.xlu0 %v256_v59  ;;  %v130_v59 = vld [vmem:[#allocation2 + $0x328] sm:$0xff] }
  0x37   :  { %v307_v61 = vadd.f32 %v130_v59, %v129_v58  ;;  %v155_v58 = vld [vmem:[#allocation2 + $0x3f0] sm:$0xff]  ;;  %v156_v59 = vld [vmem:[#allocation2 + $0x3f8] sm:$0xff] }
  0x38   :  { %v346_v62 = vadd.f32 %v156_v59, %v155_v58 }
  0x39   :  { %218 = vadd.xlane.f32.xlu1 %v217_v0  ;;  %v143_v0 = vld [vmem:[#allocation2 + $0x390] sm:$0xff] }
  0x3a   :  { %197 = vadd.xlane.f32.xlu0 %v196_v1  ;;  %v144_v1 = vld [vmem:[#allocation2 + $0x398] sm:$0xff] }
  0x3b   :  { %v328_v3 = vadd.f32 %v144_v1, %v143_v0  ;;  %v1763_v0 = vmov 0.0   ;;  %v420_v1 = vld [vmem:[%s2125_s1 + $0x38] sm:$0xff] }
  0x3c   :  { %1554 = vmatprep.subr.mxu0 %v1763_v0  ;;  %1573 = vmatprep.subr.mxu1 %v1763_v0 }
  0x3d   :  { %260 = vadd.xlane.f32.xlu1 %v259_v6  ;;  %v89_v6 = vld [vmem:[#allocation2 + $0x1e0] sm:$0xff]  ;;  %1555 = vmatpush3.msra.mxu0 %v420_v1 }
  0x3e   :  { %239 = vadd.xlane.f32.xlu0 %v238_v7  ;;  %v90_v7 = vld [vmem:[#allocation2 + $0x1e8] sm:$0xff]  ;;  %1556 = vmatprep.subr.mxu0 %v1763_v0 }
  0x3f   :  { %v247_v9 = vadd.f32 %v90_v7, %v89_v6  ;;  %v415_v6 = vld [vmem:[%s2125_s1 + $0x10] sm:$0xff]  ;;  %1570 = vmatprep.mubr.msk.f32.mxu0 %vm1764_vm0, %v1763_v0  ;;  %1575 = vmatprep.mubr.msk.f32.mxu1 %vm1764_vm0, %v1763_v0  ;;  %vm906_vm0 = vcmask 1043456  }
  0x41   :  { %281 = vadd.xlane.f32.xlu1 %v280_v12  ;;  %v117_v12 = vld [vmem:[#allocation2 + $0x2c0] sm:$0xff] }
  0x42   :  { %278 = vadd.xlane.f32.xlu0 %v277_v13  ;;  %v118_v13 = vld [vmem:[#allocation2 + $0x2c8] sm:$0xff] }
  0x43   :  { %v289_v15 = vadd.f32 %v118_v13, %v117_v12 }
  0x45   :  { %200 = vadd.xlane.f32.xlu1 %v199_v18  ;;  %v145_v18 = vld [vmem:[#allocation2 + $0x3a0] sm:$0xff] }
  0x46   :  { %176 = vadd.xlane.f32.xlu0 %v175_v19  ;;  %v146_v19 = vld [vmem:[#allocation2 + $0x3a8] sm:$0xff] }
  0x47   :  { %v331_v21 = vadd.f32 %v146_v19, %v145_v18 }
  0x49   :  { %242 = vadd.xlane.f32.xlu1 %v241_v24  ;;  %v105_v24 = vld [vmem:[#allocation2 + $0x260] sm:$0xff] }
  0x4a   :  { %221 = vadd.xlane.f32.xlu0 %v220_v25  ;;  %v106_v25 = vld [vmem:[#allocation2 + $0x268] sm:$0xff] }
  0x4b   :  { %v271_v27 = vadd.f32 %v106_v25, %v105_v24 }
  0x4d   :  { %284 = vadd.xlane.f32.xlu1 %v283_v30  ;;  %v133_v30 = vld [vmem:[#allocation2 + $0x340] sm:$0xff] }
  0x4e   :  { %263 = vadd.xlane.f32.xlu0 %v262_v31  ;;  %v134_v31 = vld [vmem:[#allocation2 + $0x348] sm:$0xff] }
  0x4f   :  { %v313_v33 = vadd.f32 %v134_v31, %v133_v30 }
  0x51   :  { %305 = vadd.xlane.f32.xlu1 %v304_v36  ;;  %v107_v36 = vld [vmem:[#allocation2 + $0x270] sm:$0xff] }
  0x52   :  { %302 = vadd.xlane.f32.xlu0 %v301_v37  ;;  %v108_v37 = vld [vmem:[#allocation2 + $0x278] sm:$0xff] }
  0x53   :  { %v274_v39 = vadd.f32 %v108_v37, %v107_v36 }
  0x55   :  { %203 = vadd.xlane.f32.xlu1 %v202_v42  ;;  %v135_v42 = vld [vmem:[#allocation2 + $0x350] sm:$0xff] }
  0x56   :  { %179 = vadd.xlane.f32.xlu0 %v178_v43  ;;  %v136_v43 = vld [vmem:[#allocation2 + $0x358] sm:$0xff] }
  0x57   :  { %v316_v45 = vadd.f32 %v136_v43, %v135_v42 }
  0x59   :  { %245 = vadd.xlane.f32.xlu1 %v244_v48  ;;  %v123_v48 = vld [vmem:[#allocation2 + $0x2f0] sm:$0xff] }
  0x5a   :  { %224 = vadd.xlane.f32.xlu0 %v223_v49  ;;  %v124_v49 = vld [vmem:[#allocation2 + $0x2f8] sm:$0xff] }
  0x5b   :  { %v298_v51 = vadd.f32 %v124_v49, %v123_v48 }
  0x5d   :  { %287 = vadd.xlane.f32.xlu1 %v286_v54  ;;  %v151_v54 = vld [vmem:[#allocation2 + $0x3d0] sm:$0xff] }
  0x5e   :  { %266 = vadd.xlane.f32.xlu0 %v265_v55  ;;  %v152_v55 = vld [vmem:[#allocation2 + $0x3d8] sm:$0xff] }
  0x5f   :  { %v340_v57 = vadd.f32 %v152_v55, %v151_v54 }
  0x61   :  { %326 = vadd.xlane.f32.xlu1 %v325_v60  ;;  %v153_v60 = vld [vmem:[#allocation2 + $0x3e0] sm:$0xff] }
  0x62   :  { %308 = vadd.xlane.f32.xlu0 %v307_v61  ;;  %v154_v61 = vld [vmem:[#allocation2 + $0x3e8] sm:$0xff] }
  0x63   :  { %v343_v63 = vadd.f32 %v154_v61, %v153_v60 }
  0x65   :  { %227 = vadd.xlane.f32.xlu1 %v226_v2  ;;  %v419_v2 = vld [vmem:[%s2125_s1 + $0x30] sm:$0xff] }
  0x66   :  { %329 = vadd.xlane.f32.xlu0 %v328_v3  ;;  %1557 = vmatpush3.msra.mxu0 %v419_v2  ;;  %v418_v3 = vld [vmem:[%s2125_s1 + $0x28] sm:$0xff] }
  0x67   :  { %1558 = vmatprep.subr.mxu0 %v1763_v0 }
  0x68   :  { %1559 = vmatpush3.msra.mxu0 %v418_v3 }
  0x69   :  { %269 = vadd.xlane.f32.xlu1 %v268_v8  ;;  %1560 = vmatprep.subr.mxu0 %v1763_v0 }
  0x6a   :  { %248 = vadd.xlane.f32.xlu0 %v247_v9  ;;  %1561 = vmatpush3.msra.mxu0 %v417_v4  ;;  %v414_v9 = vld [vmem:[%s2125_s1 + $0x8] sm:$0xff] }
  0x6b   :  { %1562 = vmatprep.subr.mxu0 %v1763_v0 }
  0x6c   :  { %1563 = vmatpush3.msra.mxu0 %v416_v5 }
  0x6d   :  { %311 = vadd.xlane.f32.xlu1 %v310_v14  ;;  %1564 = vmatprep.subr.mxu0 %v1763_v0 }
  0x6e   :  { %290 = vadd.xlane.f32.xlu0 %v289_v15  ;;  %1565 = vmatpush3.msra.mxu0 %v415_v6 }
  0x6f   :  { %1566 = vmatprep.subr.mxu0 %v1763_v0 }
  0x70   :  { %1567 = vmatpush3.msra.mxu0 %v414_v9 }
  0x71   :  { %251 = vadd.xlane.f32.xlu1 %v250_v20  ;;  %1568 = vmatprep.subr.mxu0 %v1763_v0 }
  0x72   :  { %332 = vadd.xlane.f32.xlu0 %v331_v21  ;;  %1569 = vmatpush3.msra.mxu0 %v413_v10 }
  0x75   :  { %293 = vadd.xlane.f32.xlu1 %v292_v26 }
  0x76   :  { %272 = vadd.xlane.f32.xlu0 %v271_v27 }
  0x79   :  { %335 = vadd.xlane.f32.xlu1 %v334_v32 }
  0x7a   :  { %314 = vadd.xlane.f32.xlu0 %v313_v33 }
  0x7d   :  { %296 = vadd.xlane.f32.xlu1 %v295_v38 }
  0x7e   :  { %275 = vadd.xlane.f32.xlu0 %v274_v39 }
  0x81   :  { %338 = vadd.xlane.f32.xlu1 %v337_v44 }
  0x82   :  { %317 = vadd.xlane.f32.xlu0 %v316_v45  ;;  %v485_v45 = vlaneseq }
  0x84   :  { %v486_v48 = vand.u32 127, %v485_v45  ;;  %v1872_v49 = vshrl.u32 %v485_v45, 7 }
  0x85   :  { %320 = vadd.xlane.f32.xlu1 %v319_v50 }
  0x86   :  { %299 = vadd.xlane.f32.xlu0 %v298_v51  ;;  %v491_v50 = vadd.s32 4294967288, %v486_v48  ;;  %v498_v51 = vadd.s32 4294967280, %v486_v48  ;;  %v505_v53 = vadd.s32 4294967272, %v486_v48  ;;  %v512_v55 = vadd.s32 4294967264, %v486_v48 }
  0x87   :  { %v519_v10 = vadd.s32 4294967256, %v486_v48 }
  0x88   :  { %v1882_v58 = vsub.s32 %v491_v50, %v1872_v49  ;;  %v1885_v59 = vsub.s32 %v498_v51, %v1872_v49  ;;  %v1890_v0 = vsub.s32 %v505_v53, %v1872_v49  ;;  %v1895_v4 = vsub.s32 %v512_v55, %v1872_v49 }
  0x89   :  { %323 = vadd.xlane.f32.xlu1 %v322_v56  ;;  %v1879_v56 = vsub.s32 %v486_v48, %v1872_v49 }
  0x8a   :  { %341 = vadd.xlane.f32.xlu0 %v340_v57 }
  0x8d   :  { %347 = vadd.xlane.f32.xlu1 %v346_v62 }
  0x8e   :  { %344 = vadd.xlane.f32.xlu0 %v343_v63 }
  0x9a   :  { %v183_v7 = vpop.xlane.xlu1 %182 }
  0x9b   :  { %v159_v8 = vpop.xlane.xlu0 %158  ;;  %v357_v57 = vmul.f32 0.00390625, %v183_v7 }
  0x9c   :  { %v349_v61 = vmul.f32 0.00390625, %v159_v8 }
  0x9d   :  { %v543_v8 = vrot.slane %v357_v57, %v1879_v56 }
  0x9e   :  { %v186_v11 = vpop.xlane.xlu1 %185  ;;  %v490_v50 = vrot.slane %v349_v61, %v1879_v56 }
  0x9f   :  { %v162_v12 = vpop.xlane.xlu0 %161  ;;  %v358_v62 = vmul.f32 0.00390625, %v186_v11  ;;  %v526_v11 = vadd.s32 4294967248, %v486_v48 }
  0xa0   :  { %v350_v63 = vmul.f32 0.00390625, %v162_v12  ;;  %v533_v12 = vadd.s32 4294967240, %v486_v48 }
  0xa2   :  { %v189_v13 = vpop.xlane.xlu1 %188 }
  0xa3   :  { %v165_v14 = vpop.xlane.xlu0 %164  ;;  %v359_v2 = vmul.f32 0.00390625, %v189_v13  ;;  %v547_v13 = vrot.slane %v358_v62, %v1882_v58  ;;  %v1916_v62 = vsub.s32 %v519_v10, %v1872_v49 }
  0xa4   :  { %v351_v3 = vmul.f32 0.00390625, %v165_v14  ;;  %v495_v14 = vrot.slane %v350_v63, %v1882_v58  ;;  %v1919_v63 = vsub.s32 %v526_v11, %v1872_v49 }
  0xa6   :  { %v210_v15 = vpop.xlane.xlu1 %209 }
  0xa7   :  { %v207_v16 = vpop.xlane.xlu0 %206  ;;  %v366_v5 = vmul.f32 0.00390625, %v210_v15 }
  0xa8   :  { %v365_v6 = vmul.f32 0.00390625, %v207_v16  ;;  %v552_v16 = vrot.slane %v359_v2, %v1885_v59  ;;  %v548_v2 = vsel %vm496_vm1, %v547_v13, %v543_v8 }
  0xa9   :  { %v586_v53 = vrot.slane %v366_v5, %v1882_v58 }
  0xaa   :  { %v192_v17 = vpop.xlane.xlu1 %191  ;;  %v582_v55 = vrot.slane %v365_v6, %v1879_v56 }
  0xab   :  { %v168_v18 = vpop.xlane.xlu0 %167  ;;  %v360_v7 = vmul.f32 0.00390625, %v192_v17  ;;  %v502_v17 = vrot.slane %v351_v3, %v1885_v59  ;;  %v497_v3 = vsel %vm496_vm1, %v495_v14, %v490_v50 }
  0xac   :  { %v352_v9 = vmul.f32 0.00390625, %v168_v18 }
  0xad   :  { %v557_v57 = vrot.slane %v360_v7, %v1890_v0  ;;  %v553_v7 = vsel %vm503_vm2, %v552_v16, %v548_v2 }
  0xae   :  { %v1816_v19 = vpop.xlane.xlu1 %230  ;;  %v509_v61 = vrot.slane %v352_v9, %v1890_v0  ;;  %v504_v9 = vsel %vm503_vm2, %v502_v17, %v497_v3 }
  0xaf   :  { %v1818_v20 = vpop.xlane.xlu0 %212  ;;  %v558_v8 = vsel %vm510_vm3, %v557_v57, %v553_v7 }
  0xb0   :  { %v367_v51 = vmul.f32 0.00390625, %v1818_v20  ;;  %v373_v20 = vmul.f32 0.00390625, %v1816_v19  ;;  %v511_v50 = vsel %vm510_vm3, %v509_v61, %v504_v9 }
  0xb2   :  { %v1820_v21 = vpop.xlane.xlu1 %170  ;;  %v591_v5 = vrot.slane %v367_v51, %v1885_v59 }
  0xb3   :  { %v1822_v22 = vpop.xlane.xlu0 %233  ;;  %v353_v18 = vmul.f32 0.00390625, %v1820_v21  ;;  %v1922_v21 = vsub.s32 %v533_v12, %v1872_v49  ;;  %v587_v12 = vsel %vm496_vm1, %v586_v53, %v582_v55 }
  0xb4   :  { %v374_v48 = vmul.f32 0.00390625, %v1822_v22 }
  0xb5   :  { %v516_v10 = vrot.slane %v353_v18, %v1895_v4  ;;  %v592_v18 = vsel %vm503_vm2, %v591_v5, %v587_v12 }
  0xb6   :  { %v1824_v23 = vpop.xlane.xlu1 %215  ;;  %v625_v11 = vrot.slane %v374_v48, %v1882_v58 }
  0xb7   :  { %v1826_v24 = vpop.xlane.xlu0 %194  ;;  %v368_v6 = vmul.f32 0.00390625, %v1824_v23  ;;  %v621_v23 = vrot.slane %v373_v20, %v1879_v56  ;;  %v518_v57 = vsel %vm517_vm4, %v516_v10, %v511_v50 }
  0xb8   :  { %v361_v13 = vmul.f32 0.00390625, %v1826_v24 }
  0xb9   :  { %v596_v48 = vrot.slane %v368_v6, %v1890_v0 }
  0xba   :  { %v1828_v25 = vpop.xlane.xlu1 %254  ;;  %v562_v61 = vrot.slane %v361_v13, %v1895_v4 }
  0xbb   :  { %v1830_v26 = vpop.xlane.xlu0 %236  ;;  %v381_v53 = vmul.f32 0.00390625, %v1828_v25 }
  0xbc   :  { %v375_v14 = vmul.f32 0.00390625, %v1830_v26  ;;  %v626_v26 = vsel %vm496_vm1, %v625_v11, %v621_v23  ;;  %v563_v12 = vsel %vm517_vm4, %v562_v61, %v558_v8 }
  0xbe   :  { %v1832_v27 = vpop.xlane.xlu1 %173 }
  0xbf   :  { %v1834_v28 = vpop.xlane.xlu0 %257  ;;  %v354_v51 = vmul.f32 0.00390625, %v1832_v27 }
  0xc0   :  { %v382_v16 = vmul.f32 0.00390625, %v1834_v28 }
  0xc1   :  { %v523_v3 = vrot.slane %v354_v51, %v1916_v62 }
  0xc2   :  { %v1836_v29 = vpop.xlane.xlu1 %218  ;;  %v664_v5 = vrot.slane %v382_v16, %v1882_v58 }
  0xc3   :  { %v1838_v30 = vpop.xlane.xlu0 %197  ;;  %v369_v55 = vmul.f32 0.00390625, %v1836_v29  ;;  %v630_v29 = vrot.slane %v375_v14, %v1885_v59  ;;  %v525_v14 = vsel %vm524_vm5, %v523_v3, %v518_v57 }
  0xc4   :  { %v362_v27 = vmul.f32 0.00390625, %v1838_v30  ;;  %v597_v30 = vsel %vm510_vm3, %v596_v48, %v592_v18 }
  0xc6   :  { %v1840_v31 = vpop.xlane.xlu1 %260 }
  0xc7   :  { %v1842_v32 = vpop.xlane.xlu0 %239  ;;  %v383_v28 = vmul.f32 0.00390625, %v1840_v31  ;;  %v660_v31 = vrot.slane %v381_v53, %v1879_v56 }
  0xc8   :  { %v376_v20 = vmul.f32 0.00390625, %v1842_v32  ;;  %v601_v32 = vrot.slane %v369_v55, %v1895_v4 }
  0xc9   :  { %v669_v10 = vrot.slane %v383_v28, %v1885_v59  ;;  %v665_v51 = vsel %vm496_vm1, %v664_v5, %v660_v31 }
  0xca   :  { %v1844_v33 = vpop.xlane.xlu1 %281  ;;  %v635_v50 = vrot.slane %v376_v20, %v1890_v0 }
  0xcb   :  { %v1846_v34 = vpop.xlane.xlu0 %278  ;;  %v390_v2 = vmul.f32 0.00390625, %v1844_v33  ;;  %v670_v57 = vsel %vm503_vm2, %v669_v10, %v665_v51 }
  0xcc   :  { %v389_v25 = vmul.f32 0.00390625, %v1846_v34  ;;  %v567_v34 = vrot.slane %v362_v27, %v1916_v62 }
  0xcd   :  { %v703_v13 = vrot.slane %v390_v2, %v1882_v58 }
  0xce   :  { %v1848_v35 = vpop.xlane.xlu1 %200  ;;  %v699_v23 = vrot.slane %v389_v25, %v1879_v56  ;;  %v568_v55 = vsel %vm524_vm5, %v567_v34, %v563_v12 }
  0xcf   :  { %v1850_v36 = vpop.xlane.xlu0 %176  ;;  %v363_v6 = vmul.f32 0.00390625, %v1848_v35 }
  0xd0   :  { %v355_v33 = vmul.f32 0.00390625, %v1850_v36  ;;  %v631_v36 = vsel %vm503_vm2, %v630_v29, %v626_v26  ;;  %v704_v61 = vsel %vm496_vm1, %v703_v13, %v699_v23 }
  0xd1   :  { %v572_v16 = vrot.slane %v363_v6, %v1919_v63  ;;  %v636_v28 = vsel %vm510_vm3, %v635_v50, %v631_v36 }
  0xd2   :  { %v1852_v37 = vpop.xlane.xlu1 %242  ;;  %v530_v8 = vrot.slane %v355_v33, %v1919_v63 }
  0xd3   :  { %v1854_v38 = vpop.xlane.xlu0 %221  ;;  %v377_v11 = vmul.f32 0.00390625, %v1852_v37 }
  0xd4   :  { %v370_v35 = vmul.f32 0.00390625, %v1854_v38  ;;  %v602_v38 = vsel %vm517_vm4, %v601_v32, %v597_v30  ;;  %v532_v5 = vsel %vm531_vm6, %v530_v8, %v525_v14 }
  0xd5   :  { %v640_v26 = vrot.slane %v377_v11, %v1895_v4 }
  0xd6   :  { %v1856_v39 = vpop.xlane.xlu1 %284  ;;  %v606_v27 = vrot.slane %v370_v35, %v1916_v62 }
  0xd7   :  { %v1858_v40 = vpop.xlane.xlu0 %263  ;;  %v391_v20 = vmul.f32 0.00390625, %v1856_v39  ;;  %v641_v31 = vsel %vm517_vm4, %v640_v26, %v636_v28 }
  0xd8   :  { %v384_v2 = vmul.f32 0.00390625, %v1858_v40  ;;  %v607_v40 = vsel %vm524_vm5, %v606_v27, %v602_v38 }
  0xda   :  { %v1860_v41 = vpop.xlane.xlu1 %305  ;;  %v674_v10 = vrot.slane %v384_v2, %v1890_v0 }
  0xdb   :  { %v1862_v42 = vpop.xlane.xlu0 %302  ;;  %v398_v25 = vmul.f32 0.00390625, %v1860_v41 }
  0xdc   :  { %v397_v6 = vmul.f32 0.00390625, %v1862_v42 }
  0xdd   :  { %v742_v11 = vrot.slane %v398_v25, %v1882_v58 }
  0xde   :  { %v1864_v43 = vpop.xlane.xlu1 %203 }
  0xdf   :  { %v1866_v44 = vpop.xlane.xlu0 %179  ;;  %v364_v18 = vmul.f32 0.00390625, %v1864_v43 }
  0xe0   :  { %v356_v48 = vmul.f32 0.00390625, %v1866_v44  ;;  %v573_v44 = vsel %vm531_vm6, %v572_v16, %v568_v55 }
  0xe1   :  { %v577_v30 = vrot.slane %v364_v18, %v1922_v21  ;;  %v675_v18 = vsel %vm510_vm3, %v674_v10, %v670_v57 }
  0xe2   :  { %v1868_v46 = vpop.xlane.xlu1 %245  ;;  %v537_v39 = vrot.slane %v356_v48, %v1922_v21 }
  0xe3   :  { %v1870_v47 = vpop.xlane.xlu0 %224  ;;  %v378_v41 = vmul.f32 0.00390625, %v1868_v46  ;;  %v738_v46 = vrot.slane %v397_v6, %v1879_v56 }
  0xe4   :  { %v371_v43 = vmul.f32 0.00390625, %v1870_v47  ;;  %v539_v13 = vsel %vm538_vm7, %v537_v39, %v532_v5 }
  0xe6   :  { %v1874_v52 = vpop.xlane.xlu1 %287  ;;  %v611_v33 = vrot.slane %v371_v43, %v1919_v63 }
  0xe7   :  { %v1876_v54 = vpop.xlane.xlu0 %266  ;;  %v392_v32 = vmul.f32 0.00390625, %v1874_v52  ;;  %v578_v52 = vsel %vm538_vm7, %v577_v30, %v573_v44 }
  0xe8   :  { %v385_v34 = vmul.f32 0.00390625, %v1876_v54  ;;  %v612_v16 = vsel %vm531_vm6, %v611_v33, %v607_v40 }
  0xe9   :  { %v713_v36 = vrot.slane %v392_v32, %v1890_v0 }
  0xea   :  { %v1887_v60 = vpop.xlane.xlu1 %326  ;;  %v679_v38 = vrot.slane %v385_v34, %v1895_v4 }
  0xeb   :  { %v1892_v1 = vpop.xlane.xlu0 %308  ;;  %v405_v14 = vmul.f32 0.00390625, %v1887_v60  ;;  %v743_v60 = vsel %vm496_vm1, %v742_v11, %v738_v46 }
  0xec   :  { %v399_v42 = vmul.f32 0.00390625, %v1892_v1  ;;  %v645_v1 = vrot.slane %v378_v41, %v1916_v62 }
  0xed   :  { %v777_v43 = vrot.slane %v405_v14, %v1879_v56 }
  0xee   :  { %v1898_v45 = vpop.xlane.xlu1 %227  ;;  %v747_v8 = vrot.slane %v399_v42, %v1885_v59 }
  0xef   :  { %v1904_v15 = vpop.xlane.xlu0 %329  ;;  %v372_v29 = vmul.f32 0.00390625, %v1898_v45  ;;  %v708_v45 = vrot.slane %v391_v20, %v1885_v59  ;;  %v646_v20 = vsel %vm524_vm5, %v645_v1, %v641_v31 }
  0xf0   :  { %v406_v12 = vmul.f32 0.00390625, %v1904_v15  ;;  %v748_v44 = vsel %vm503_vm2, %v747_v8, %v743_v60 }
  0xf1   :  { %v616_v35 = vrot.slane %v372_v29, %v1922_v21  ;;  %v709_v15 = vsel %vm503_vm2, %v708_v45, %v704_v61 }
  0xf2   :  { %v1924_v22 = vpop.xlane.xlu1 %269  ;;  %v781_v48 = vrot.slane %v406_v12, %v1882_v58  ;;  %v714_v57 = vsel %vm510_vm3, %v713_v36, %v709_v15 }
  0xf3   :  { %v1930_v19 = vpop.xlane.xlu0 %248  ;;  %v386_v23 = vmul.f32 0.00390625, %v1924_v22  ;;  %v617_v22 = vsel %vm538_vm7, %v616_v35, %v612_v16 }
  0xf4   :  { %v379_v51 = vmul.f32 0.00390625, %v1930_v19  ;;  %v814_v19 = vsel %vm813_vm8, %v578_v52, %v539_v13  ;;  %v782_v29 = vsel %vm496_vm1, %v781_v48, %v777_v43  ;;  %vm902_vm1 = vcmask 31744  }
  0xf5   :  { %v684_v27 = vrot.slane %v386_v23, %v1916_v62  ;;  %v816_v2 = vsel %vm815_vm9, %v617_v22, %v814_v19 }
  0xf6   :  { %v1944_v17 = vpop.xlane.xlu1 %311  ;;  %v650_v58 = vrot.slane %v379_v51, %v1919_v63 }
  0xf7   :  { %v1950_v24 = vpop.xlane.xlu0 %290  ;;  %v400_v55 = vmul.f32 0.00390625, %v1944_v17  ;;  %v680_v17 = vsel %vm517_vm4, %v679_v38, %v675_v18 }
  0xf8   :  { %v393_v28 = vmul.f32 0.00390625, %v1950_v24  ;;  %v685_v56 = vsel %vm524_vm5, %v684_v27, %v680_v17 }
  0xf9   :  { %v752_v24 = vrot.slane %v400_v55, %v1890_v0 }
  0xfa   :  { %v1964_v7 = vpop.xlane.xlu1 %251  ;;  %v718_v39 = vrot.slane %v393_v28, %v1895_v4 }
  0xfb   :  { %v1970_v9 = vpop.xlane.xlu0 %332  ;;  %v380_v25 = vmul.f32 0.00390625, %v1964_v7  ;;  %v651_v7 = vsel %vm531_vm6, %v650_v58, %v646_v20  ;;  %v753_v10 = vsel %vm510_vm3, %v752_v24, %v748_v44 }
  0xfc   :  { %v407_v5 = vmul.f32 0.00390625, %v1970_v9  ;;  %v719_v12 = vsel %vm517_vm4, %v718_v39, %v714_v57 }
  0xfd   :  { %v655_v9 = vrot.slane %v380_v25, %v1922_v21 }
  0xfe   :  { %v1984_v37 = vpop.xlane.xlu1 %293  ;;  %v786_v11 = vrot.slane %v407_v5, %v1885_v59 }
  0xff   :  { %v1990_v53 = vpop.xlane.xlu0 %272  ;;  %v394_v6 = vmul.f32 0.00390625, %v1984_v37  ;;  %v656_v1 = vsel %vm538_vm7, %v655_v9, %v651_v7  ;;  %v1023_v9 = vsub.s32 1, %v1872_v49 }
 0x100   :  { %v387_v31 = vmul.f32 0.00390625, %v1990_v53  ;;  %v787_v15 = vsel %vm503_vm2, %v786_v11, %v782_v29  ;;  %v818_v43 = vsel %vm817_vm10, %v656_v1, %v816_v2  ;;  %v1589_v1 = vld [vmem:[#allocation2 + $0x18] sm:$0xff] }
 0x101   :  { %v723_v53 = vrot.slane %v394_v6, %v1916_v62 }
 0x102   :  { %v2004_v3 = vpop.xlane.xlu1 %335 }
 0x103   :  { %v315_v47 = vpop.xlane.xlu0 %314  ;;  %v408_v37 = vmul.f32 0.00390625, %v2004_v3  ;;  %v724_v16 = vsel %vm524_vm5, %v723_v53, %v719_v12  ;;  %v1128_v53 = vsub.s32 4, %v1872_v49 }
 0x104   :  { %v401_v40 = vmul.f32 0.00390625, %v315_v47 }
 0x105   :  { %v791_v36 = vrot.slane %v408_v37, %v1890_v0 }
 0x106   :  { %v297_v50 = vpop.xlane.xlu1 %296  ;;  %v757_v46 = vrot.slane %v401_v40, %v1895_v4 }
 0x107   :  { %v276_v54 = vpop.xlane.xlu0 %275  ;;  %v395_v32 = vmul.f32 0.00390625, %v297_v50  ;;  %v689_v50 = vrot.slane %v387_v31, %v1919_v63 }
 0x108   :  { %v388_v45 = vmul.f32 0.00390625, %v276_v54  ;;  %v758_v48 = vsel %vm517_vm4, %v757_v46, %v753_v10  ;;  %v1093_v10 = vsub.s32 3, %v1872_v49 }
 0x109   :  { %v728_v13 = vrot.slane %v395_v32, %v1919_v63  ;;  %v690_v22 = vsel %vm531_vm6, %v689_v50, %v685_v56  ;;  %v988_v32 = vsub.s32 0, %v1872_v49  ;;  %v1198_v50 = vsub.s32 6, %v1872_v49 }
 0x10a   :  { %v339_v26 = vpop.xlane.xlu1 %338  ;;  %v694_v23 = vrot.slane %v388_v45, %v1922_v21 }
 0x10b   :  { %v318_v61 = vpop.xlane.xlu0 %317  ;;  %v409_v47 = vmul.f32 0.00390625, %v339_v26  ;;  %v729_v60 = vsel %vm531_vm6, %v728_v13, %v724_v16 }
 0x10c   :  { %v402_v33 = vmul.f32 0.00390625, %v318_v61  ;;  %v695_v19 = vsel %vm538_vm7, %v694_v23, %v690_v22  ;;  %v1593_v22 = vld [vmem:[#allocation2 + $0x28] sm:$0xff] }
 0x10d   :  { %v796_v38 = vrot.slane %v409_v47, %v1895_v4  ;;  %v792_v4 = vsel %vm510_vm3, %v791_v36, %v787_v15  ;;  %v820_v44 = vsel %vm819_vm11, %v695_v19, %v818_v43  ;;  %v1591_v15 = vld [vmem:[#allocation2 + $0x8] sm:$0xff] }
 0x10e   :  { %v321_v30 = vpop.xlane.xlu1 %320  ;;  %v762_v54 = vrot.slane %v402_v33, %v1916_v62 }
 0x10f   :  { %v300_v41 = vpop.xlane.xlu0 %299  ;;  %v403_v34 = vmul.f32 0.00390625, %v321_v30 }
 0x110   :  { %v396_v42 = vmul.f32 0.00390625, %v300_v41  ;;  %v763_v27 = vsel %vm524_vm5, %v762_v54, %v758_v48  ;;  %v1588_v54 = vld [vmem:[#allocation2 + $0x10] sm:$0xff] }
 0x111   :  { %v767_v14 = vrot.slane %v403_v34, %v1919_v63  ;;  %v1058_v34 = vsub.s32 2, %v1872_v49 }
 0x112   :  { %v324_v35 = vpop.xlane.xlu1 %323  ;;  %v733_v51 = vrot.slane %v396_v42, %v1922_v21 }
 0x113   :  { %v404_v52 = vmul.f32 0.00390625, %v324_v35  ;;  %v342_v3 = vpop.xlane.xlu0 %341  ;;  %v768_v61 = vsel %vm531_vm6, %v767_v14, %v763_v27  ;;  %v1163_v35 = vsub.s32 5, %v1872_v49  ;;  %v1590_v14 = vld [vmem:[#allocation2] sm:$0xff] }
 0x114   :  { %v410_v59 = vmul.f32 0.00390625, %v342_v3  ;;  %v734_v20 = vsel %vm538_vm7, %v733_v51, %v729_v60 }
 0x115   :  { %v772_v8 = vrot.slane %v404_v52, %v1922_v21  ;;  %v822_v24 = vsel %vm821_vm12, %v734_v20, %v820_v44  ;;  %v1233_v52 = vsub.s32 7, %v1872_v49 }
 0x116   :  { %v348_v18 = vpop.xlane.xlu1 %347  ;;  %v801_v55 = vrot.slane %v410_v59, %v1916_v62  ;;  %v797_v62 = vsel %vm517_vm4, %v796_v38, %v792_v4 }
 0x117   :  { %v345_v0 = vpop.xlane.xlu0 %344  ;;  %v412_v26 = vmul.f32 0.00390625, %v348_v18  ;;  %v773_v58 = vsel %vm538_vm7, %v772_v8, %v768_v61  ;;  %v1592_v8 = vld [vmem:[#allocation2 + $0x20] sm:$0xff]  ;;  %v1597_v61 = vld [vmem:[#allocation2 + $0x38] sm:$0xff] }
 0x118   :  { %v411_v28 = vmul.f32 0.00390625, %v345_v0  ;;  %v802_v25 = vsel %vm524_vm5, %v801_v55, %v797_v62  ;;  %v824_v2 = vsel %vm823_vm13, %v773_v58, %v822_v24  ;;  %v1594_v55 = vld [vmem:[#allocation2 + $0x40] sm:$0xff]  ;;  %v1599_v62 = vld [vmem:[#allocation2 + $0x68] sm:$0xff]  ;;  %v1601_v24 = vld [vmem:[#allocation2 + $0x58] sm:$0xff] }
 0x119   :  { %v811_v57 = vrot.slane %v412_v26, %v1922_v21  ;;  %v1595_v26 = vld [vmem:[#allocation2 + $0x48] sm:$0xff] }
 0x11a   :  { %v806_v17 = vrot.slane %v411_v28, %v1919_v63  ;;  %v901_v63 = vld [vmem:[%s2126_s2] sm:$0xf]  ;;  %v1596_v28 = vld [vmem:[#allocation2 + $0x30] sm:$0xff]  ;;  %s1765_s2 = smov [#allocation5]  }
 0x11b   :  { %1574 = vmatpush3.msk.msra.mxu1 %vm906_vm0, %v901_v63  ;;  %v1603_v63 = vld [vmem:[#allocation2 + $0x88] sm:$0xff]  ;;  %s1527_s8 = sshll.u32 %s1765_s2, 4  ;;  %s1528_s8 = int_to_ptr.vmem [resolvable:$true] %s1527_s8 }
 0x11c   :  { %v807_v29 = vsel %vm531_vm6, %v806_v17, %v802_v25  ;;  %v1600_v25 = vld [vmem:[#allocation2 + $0x50] sm:$0xff]  ;;  %s1736_s9 = scalar_lea.vmem %s1528_s8, 16384  ;;  %p1741_p6 = scmp.lt.s32.totalorder %s1528_s8, %s1528_s8 }
 0x11d   :  { %v812_v21 = vsel %vm538_vm7, %v811_v57, %v807_v29  ;;  %v1598_v57 = vld [vmem:[#allocation2 + $0x60] sm:$0xff]  ;;  %p1737_p5 = scmp.ne.s32.totalorder %s1528_s8, %s1736_s9  ;;  %p1742_p7 = scmp.lt.s32.totalorder %s1736_s9, %s1736_s9 }
 0x11e   :  { %v826_v5 = vsel %vm825_vm14, %v812_v21, %v824_v2  ;;  %v1602_v2 = vld [vmem:[#allocation2 + $0x80] sm:$0xff] }
 0x11f   :  { %1571 = vmatmul.mubr.msk.f32.vlgmr.msra.gmra.mxu0 %vm827_vm15, %v826_v5  ;;  %p1743_p8 = por %p1742_p7, %p1741_p6 }
 0x121   :  { %p1744_p9 = pnand %p1743_p8, %p1737_p5 }
 0x1df   :  { %v896_v6 = vpop.f32.mrf.mxu0 }
 0x1e0   :  { %v900_v30 = vmax.f32 %v896_v6, 0.0 }
 0x1e1   :  { %v1572_v56 = vpop.f32.mrf.mxu0 }
 0x1e2   :  { %1576 = vmatmul.mubr.msk.f32.vlgmr.msra.gmra.mxu1 %vm902_vm1, %v900_v30 }
 0x2a2   :  { %v976_v39 = vpop.f32.mrf.mxu1 }
 0x2a3   :  { %v1542_v31 = vmul.f32 -1.442695, %v976_v39  ;;  %v1604_v39 = vld [vmem:[#allocation2 + $0x70] sm:$0xff] }
 0x2a4   :  { %v1577_v40 = vpop.f32.mrf.mxu1 }
 0x2a5   :  { %1584 = vpow2.f32 %v1542_v31  ;;  %v1605_v40 = vld [vmem:[#allocation2 + $0x78] sm:$0xff] }
 0x2b2   :  { %v1585_v41 = vpop.eup %1584 }
 0x2b3   :  { %v983_v7 = vadd.f32 1.0, %v1585_v41 }
 0x2b5   :  { %1586 = vrcp.f32 %v983_v7  ;;  %v1606_v7 = vld [vmem:[#allocation2 + $0xa0] sm:$0xff] }
 0x2c2   :  { %v2101_v45 = vpop.eup %1586 }
 0x2c3   :  { %v989_v33 = vrot.slane %v2101_v45, %v988_v32  ;;  %v1024_v37 = vrot.slane %v2101_v45, %v1023_v9  ;;  %v1059_v42 = vrot.slane %v2101_v45, %v1058_v34  ;;  %v1094_v11 = vrot.slane %v2101_v45, %v1093_v10  ;;  %v1608_v34 = vld [vmem:[#allocation2 + $0x90] sm:$0xff]  ;;  %v1609_v10 = vld [vmem:[#allocation2 + $0x98] sm:$0xff] }
 0x2c4   :  { %v1129_v47 = vrot.slane %v2101_v45, %v1128_v53  ;;  %v1164_v12 = vrot.slane %v2101_v45, %v1163_v35  ;;  %v1199_v46 = vrot.slane %v2101_v45, %v1198_v50  ;;  %v1234_v3 = vrot.slane %v2101_v45, %v1233_v52  ;;  %v1607_v45 = vld [vmem:[#allocation2 + $0xa8] sm:$0xff]  ;;  %v1610_v53 = vld [vmem:[#allocation2 + $0xc0] sm:$0xff]  ;;  %v1612_v52 = vld [vmem:[#allocation2 + $0xb0] sm:$0xff] }
 0x2c5   :  { %995 = vbcast.lane.b32.xlu1 %v989_v33, 264  ;;  %991 = vbcast.lane.b32.xlu0 %v989_v33, 256  ;;  %v1611_v35 = vld [vmem:[#allocation2 + $0xc8] sm:$0xff] }
 0x2c9   :  { %999 = vbcast.lane.b32.xlu1 %v989_v33, 272  ;;  %1007 = vbcast.lane.b32.xlu0 %v989_v33, 288 }
 0x2cd   :  { %1003 = vbcast.lane.b32.xlu1 %v989_v33, 280  ;;  %1015 = vbcast.lane.b32.xlu0 %v989_v33, 304 }
 0x2d1   :  { %1011 = vbcast.lane.b32.xlu1 %v989_v33, 296  ;;  %1026 = vbcast.lane.b32.xlu0 %v1024_v37, 256 }
 0x2d5   :  { %1019 = vbcast.lane.b32.xlu1 %v989_v33, 312  ;;  %1034 = vbcast.lane.b32.xlu0 %v1024_v37, 272 }
 0x2d9   :  { %1030 = vbcast.lane.b32.xlu1 %v1024_v37, 264  ;;  %1042 = vbcast.lane.b32.xlu0 %v1024_v37, 288 }
 0x2dd   :  { %1038 = vbcast.lane.b32.xlu1 %v1024_v37, 280  ;;  %1050 = vbcast.lane.b32.xlu0 %v1024_v37, 304 }
 0x2e1   :  { %1046 = vbcast.lane.b32.xlu1 %v1024_v37, 296  ;;  %1061 = vbcast.lane.b32.xlu0 %v1059_v42, 256 }
 0x2e5   :  { %1054 = vbcast.lane.b32.xlu1 %v1024_v37, 312  ;;  %1069 = vbcast.lane.b32.xlu0 %v1059_v42, 272 }
 0x2e9   :  { %1065 = vbcast.lane.b32.xlu1 %v1059_v42, 264  ;;  %1077 = vbcast.lane.b32.xlu0 %v1059_v42, 288 }
 0x2ed   :  { %1073 = vbcast.lane.b32.xlu1 %v1059_v42, 280  ;;  %1085 = vbcast.lane.b32.xlu0 %v1059_v42, 304 }
 0x2f1   :  { %1081 = vbcast.lane.b32.xlu1 %v1059_v42, 296  ;;  %1096 = vbcast.lane.b32.xlu0 %v1094_v11, 256 }
 0x2f5   :  { %1089 = vbcast.lane.b32.xlu1 %v1059_v42, 312  ;;  %1104 = vbcast.lane.b32.xlu0 %v1094_v11, 272 }
 0x2f9   :  { %1100 = vbcast.lane.b32.xlu1 %v1094_v11, 264  ;;  %1112 = vbcast.lane.b32.xlu0 %v1094_v11, 288 }
 0x2fd   :  { %1108 = vbcast.lane.b32.xlu1 %v1094_v11, 280  ;;  %1120 = vbcast.lane.b32.xlu0 %v1094_v11, 304 }
 0x301   :  { %1116 = vbcast.lane.b32.xlu1 %v1094_v11, 296  ;;  %1131 = vbcast.lane.b32.xlu0 %v1129_v47, 256 }
 0x305   :  { %1124 = vbcast.lane.b32.xlu1 %v1094_v11, 312  ;;  %1139 = vbcast.lane.b32.xlu0 %v1129_v47, 272 }
 0x309   :  { %1135 = vbcast.lane.b32.xlu1 %v1129_v47, 264  ;;  %1147 = vbcast.lane.b32.xlu0 %v1129_v47, 288 }
 0x30d   :  { %1143 = vbcast.lane.b32.xlu1 %v1129_v47, 280  ;;  %1155 = vbcast.lane.b32.xlu0 %v1129_v47, 304 }
 0x311   :  { %1151 = vbcast.lane.b32.xlu1 %v1129_v47, 296  ;;  %1166 = vbcast.lane.b32.xlu0 %v1164_v12, 256 }
 0x315   :  { %1159 = vbcast.lane.b32.xlu1 %v1129_v47, 312  ;;  %1174 = vbcast.lane.b32.xlu0 %v1164_v12, 272 }
 0x319   :  { %1170 = vbcast.lane.b32.xlu1 %v1164_v12, 264  ;;  %1182 = vbcast.lane.b32.xlu0 %v1164_v12, 288 }
 0x31d   :  { %1178 = vbcast.lane.b32.xlu1 %v1164_v12, 280  ;;  %1190 = vbcast.lane.b32.xlu0 %v1164_v12, 304 }
 0x321   :  { %1186 = vbcast.lane.b32.xlu1 %v1164_v12, 296  ;;  %1201 = vbcast.lane.b32.xlu0 %v1199_v46, 256 }
 0x325   :  { %1194 = vbcast.lane.b32.xlu1 %v1164_v12, 312  ;;  %1209 = vbcast.lane.b32.xlu0 %v1199_v46, 272 }
 0x329   :  { %1205 = vbcast.lane.b32.xlu1 %v1199_v46, 264  ;;  %1217 = vbcast.lane.b32.xlu0 %v1199_v46, 288 }
 0x32d   :  { %1213 = vbcast.lane.b32.xlu1 %v1199_v46, 280  ;;  %1225 = vbcast.lane.b32.xlu0 %v1199_v46, 304 }
 0x331   :  { %1221 = vbcast.lane.b32.xlu1 %v1199_v46, 296  ;;  %1236 = vbcast.lane.b32.xlu0 %v1234_v3, 256 }
 0x335   :  { %1229 = vbcast.lane.b32.xlu1 %v1199_v46, 312  ;;  %1244 = vbcast.lane.b32.xlu0 %v1234_v3, 272 }
 0x337   :  { %v996_v13 = vpop.permute.xlu1 %995  ;;  %v992_v23 = vpop.permute.xlu0 %991 }
 0x338   :  { %v1268_v59 = vmul.f32 %v1588_v54, %v996_v13  ;;  %v1269_v36 = vmul.f32 %v1589_v1, %v996_v13  ;;  %v1266_v51 = vmul.f32 %v1590_v14, %v992_v23  ;;  %v1267_v16 = vmul.f32 %v1591_v15, %v992_v23  ;;  %v1613_v13 = vld [vmem:[#allocation2 + $0xb8] sm:$0xff]  ;;  %v1614_v54 = vld [vmem:[#allocation2 + $0xe0] sm:$0xff]  ;;  %v1615_v1 = vld [vmem:[#allocation2 + $0xe8] sm:$0xff] }
 0x339   :  { %1240 = vbcast.lane.b32.xlu1 %v1234_v3, 264  ;;  %1252 = vbcast.lane.b32.xlu0 %v1234_v3, 288  ;;  %v1616_v15 = vld [vmem:[#allocation2 + $0xd0] sm:$0xff] }
 0x33a   :  { %1396 = vst [vmem:[#allocation5 + $0x10] sm:$0xff] %v1268_v59  ;;  %1397 = vst [vmem:[#allocation5 + $0x18] sm:$0xff] %v1269_v36 }
 0x33b   :  { %1394 = vst [vmem:[#allocation5] sm:$0xff] %v1266_v51  ;;  %1395 = vst [vmem:[#allocation5 + $0x8] sm:$0xff] %v1267_v16  ;;  %v1000_v49 = vpop.permute.xlu1 %999  ;;  %v1008_v38 = vpop.permute.xlu0 %1007 }
 0x33c   :  { %v1270_v18 = vmul.f32 %v1592_v8, %v1000_v49  ;;  %v1271_v48 = vmul.f32 %v1593_v22, %v1000_v49  ;;  %v1274_v0 = vmul.f32 %v1594_v55, %v1008_v38  ;;  %v1275_v60 = vmul.f32 %v1595_v26, %v1008_v38  ;;  %v1617_v49 = vld [vmem:[#allocation2 + $0xd8] sm:$0xff]  ;;  %v1618_v8 = vld [vmem:[#allocation2 + $0x100] sm:$0xff]  ;;  %v1619_v22 = vld [vmem:[#allocation2 + $0x108] sm:$0xff] }
 0x33d   :  { %1248 = vbcast.lane.b32.xlu1 %v1234_v3, 280  ;;  %1260 = vbcast.lane.b32.xlu0 %v1234_v3, 304  ;;  %v1620_v26 = vld [vmem:[#allocation2 + $0xf0] sm:$0xff] }
 0x33e   :  { %1398 = vst [vmem:[#allocation5 + $0x20] sm:$0xff] %v1270_v18  ;;  %1399 = vst [vmem:[#allocation5 + $0x28] sm:$0xff] %v1271_v48 }
 0x33f   :  { %1402 = vst [vmem:[#allocation5 + $0x40] sm:$0xff] %v1274_v0  ;;  %1403 = vst [vmem:[#allocation5 + $0x48] sm:$0xff] %v1275_v60  ;;  %v1004_v19 = vpop.permute.xlu1 %1003  ;;  %v1016_v27 = vpop.permute.xlu0 %1015 }
 0x340   :  { %v1272_v4 = vmul.f32 %v1596_v28, %v1004_v19  ;;  %v1273_v20 = vmul.f32 %v1597_v61, %v1004_v19  ;;  %v1278_v43 = vmul.f32 %v1598_v57, %v1016_v27  ;;  %v1279_v58 = vmul.f32 %v1599_v62, %v1016_v27  ;;  %v1621_v19 = vld [vmem:[#allocation2 + $0xf8] sm:$0xff]  ;;  %v1622_v28 = vld [vmem:[#allocation2 + $0x120] sm:$0xff]  ;;  %v1623_v61 = vld [vmem:[#allocation2 + $0x128] sm:$0xff] }
 0x341   :  { %1256 = vbcast.lane.b32.xlu1 %v1234_v3, 296  ;;  %v1624_v62 = vld [vmem:[#allocation2 + $0x110] sm:$0xff] }
 0x342   :  { %1400 = vst [vmem:[#allocation5 + $0x30] sm:$0xff] %v1272_v4  ;;  %1401 = vst [vmem:[#allocation5 + $0x38] sm:$0xff] %v1273_v20 }
 0x343   :  { %1406 = vst [vmem:[#allocation5 + $0x60] sm:$0xff] %v1278_v43  ;;  %1407 = vst [vmem:[#allocation5 + $0x68] sm:$0xff] %v1279_v58  ;;  %v1012_v17 = vpop.permute.xlu1 %1011  ;;  %v1027_v44 = vpop.permute.xlu0 %1026 }
 0x344   :  { %v1276_v29 = vmul.f32 %v1600_v25, %v1012_v17  ;;  %v1277_v21 = vmul.f32 %v1601_v24, %v1012_v17  ;;  %v1282_v5 = vmul.f32 %v1602_v2, %v1027_v44  ;;  %v1283_v6 = vmul.f32 %v1603_v63, %v1027_v44  ;;  %v1625_v17 = vld [vmem:[#allocation2 + $0x118] sm:$0xff]  ;;  %v1626_v25 = vld [vmem:[#allocation2 + $0x140] sm:$0xff]  ;;  %v1627_v24 = vld [vmem:[#allocation2 + $0x148] sm:$0xff] }
 0x345   :  { %1264 = vbcast.lane.b32.xlu1 %v1234_v3, 312  ;;  %v1628_v63 = vld [vmem:[#allocation2 + $0x130] sm:$0xff] }
 0x346   :  { %1404 = vst [vmem:[#allocation5 + $0x50] sm:$0xff] %v1276_v29  ;;  %1405 = vst [vmem:[#allocation5 + $0x58] sm:$0xff] %v1277_v21 }
 0x347   :  { %1410 = vst [vmem:[#allocation5 + $0x80] sm:$0xff] %v1282_v5  ;;  %1411 = vst [vmem:[#allocation5 + $0x88] sm:$0xff] %v1283_v6  ;;  %v1020_v30 = vpop.permute.xlu1 %1019  ;;  %v1035_v56 = vpop.permute.xlu0 %1034 }
 0x348   :  { %v1280_v31 = vmul.f32 %v1604_v39, %v1020_v30  ;;  %v1281_v41 = vmul.f32 %v1605_v40, %v1020_v30  ;;  %v1286_v32 = vmul.f32 %v1606_v7, %v1035_v56  ;;  %v1287_v33 = vmul.f32 %v1607_v45, %v1035_v56  ;;  %v1629_v30 = vld [vmem:[#allocation2 + $0x138] sm:$0xff]  ;;  %v1630_v39 = vld [vmem:[#allocation2 + $0x160] sm:$0xff]  ;;  %v1631_v40 = vld [vmem:[#allocation2 + $0x168] sm:$0xff] }
 0x349   :  { %v1632_v45 = vld [vmem:[#allocation2 + $0x150] sm:$0xff] }
 0x34a   :  { %1408 = vst [vmem:[#allocation5 + $0x70] sm:$0xff] %v1280_v31  ;;  %1409 = vst [vmem:[#allocation5 + $0x78] sm:$0xff] %v1281_v41 }
 0x34b   :  { %1414 = vst [vmem:[#allocation5 + $0xa0] sm:$0xff] %v1286_v32  ;;  %1415 = vst [vmem:[#allocation5 + $0xa8] sm:$0xff] %v1287_v33  ;;  %v1031_v9 = vpop.permute.xlu1 %1030  ;;  %v1043_v37 = vpop.permute.xlu0 %1042 }
 0x34c   :  { %v1284_v42 = vmul.f32 %v1608_v34, %v1031_v9  ;;  %v1285_v11 = vmul.f32 %v1609_v10, %v1031_v9  ;;  %v1290_v47 = vmul.f32 %v1610_v53, %v1043_v37  ;;  %v1291_v12 = vmul.f32 %v1611_v35, %v1043_v37  ;;  %v1633_v9 = vld [vmem:[#allocation2 + $0x158] sm:$0xff]  ;;  %v1634_v34 = vld [vmem:[#allocation2 + $0x180] sm:$0xff]  ;;  %v1635_v10 = vld [vmem:[#allocation2 + $0x188] sm:$0xff] }
 0x34d   :  { %v1636_v35 = vld [vmem:[#allocation2 + $0x170] sm:$0xff] }
 0x34e   :  { %1412 = vst [vmem:[#allocation5 + $0x90] sm:$0xff] %v1284_v42  ;;  %1413 = vst [vmem:[#allocation5 + $0x98] sm:$0xff] %v1285_v11 }
 0x34f   :  { %1418 = vst [vmem:[#allocation5 + $0xc0] sm:$0xff] %v1290_v47  ;;  %1419 = vst [vmem:[#allocation5 + $0xc8] sm:$0xff] %v1291_v12  ;;  %v1039_v50 = vpop.permute.xlu1 %1038  ;;  %v1051_v46 = vpop.permute.xlu0 %1050 }
 0x350   :  { %v1288_v3 = vmul.f32 %v1612_v52, %v1039_v50  ;;  %v1289_v23 = vmul.f32 %v1613_v13, %v1039_v50  ;;  %v1294_v59 = vmul.f32 %v1614_v54, %v1051_v46  ;;  %v1295_v36 = vmul.f32 %v1615_v1, %v1051_v46  ;;  %v1637_v50 = vld [vmem:[#allocation2 + $0x178] sm:$0xff]  ;;  %v1638_v52 = vld [vmem:[#allocation2 + $0x1a0] sm:$0xff]  ;;  %v1639_v13 = vld [vmem:[#allocation2 + $0x1a8] sm:$0xff] }
 0x351   :  { %v1640_v1 = vld [vmem:[#allocation2 + $0x190] sm:$0xff] }
 0x352   :  { %1416 = vst [vmem:[#allocation5 + $0xb0] sm:$0xff] %v1288_v3  ;;  %1417 = vst [vmem:[#allocation5 + $0xb8] sm:$0xff] %v1289_v23 }
 0x353   :  { %1422 = vst [vmem:[#allocation5 + $0xe0] sm:$0xff] %v1294_v59  ;;  %1423 = vst [vmem:[#allocation5 + $0xe8] sm:$0xff] %v1295_v36  ;;  %v1047_v14 = vpop.permute.xlu1 %1046  ;;  %v1062_v51 = vpop.permute.xlu0 %1061 }
 0x354   :  { %v1292_v16 = vmul.f32 %v1616_v15, %v1047_v14  ;;  %v1293_v38 = vmul.f32 %v1617_v49, %v1047_v14  ;;  %v1298_v18 = vmul.f32 %v1618_v8, %v1062_v51  ;;  %v1299_v48 = vmul.f32 %v1619_v22, %v1062_v51  ;;  %v1641_v14 = vld [vmem:[#allocation2 + $0x198] sm:$0xff]  ;;  %v1642_v15 = vld [vmem:[#allocation2 + $0x1c0] sm:$0xff]  ;;  %v1643_v49 = vld [vmem:[#allocation2 + $0x1c8] sm:$0xff] }
 0x355   :  { %v1644_v22 = vld [vmem:[#allocation2 + $0x1b0] sm:$0xff] }
 0x356   :  { %1420 = vst [vmem:[#allocation5 + $0xd0] sm:$0xff] %v1292_v16  ;;  %1421 = vst [vmem:[#allocation5 + $0xd8] sm:$0xff] %v1293_v38 }
 0x357   :  { %1426 = vst [vmem:[#allocation5 + $0x100] sm:$0xff] %v1298_v18  ;;  %1427 = vst [vmem:[#allocation5 + $0x108] sm:$0xff] %v1299_v48  ;;  %v1055_v55 = vpop.permute.xlu1 %1054  ;;  %v1070_v0 = vpop.permute.xlu0 %1069 }
 0x358   :  { %v1296_v60 = vmul.f32 %v1620_v26, %v1055_v55  ;;  %v1297_v27 = vmul.f32 %v1621_v19, %v1055_v55  ;;  %v1302_v4 = vmul.f32 %v1622_v28, %v1070_v0  ;;  %v1303_v20 = vmul.f32 %v1623_v61, %v1070_v0  ;;  %v1645_v55 = vld [vmem:[#allocation2 + $0x1b8] sm:$0xff]  ;;  %v1646_v26 = vld [vmem:[#allocation2 + $0x1e0] sm:$0xff]  ;;  %v1647_v19 = vld [vmem:[#allocation2 + $0x1e8] sm:$0xff] }
 0x359   :  { %v1648_v61 = vld [vmem:[#allocation2 + $0x1d0] sm:$0xff] }
 0x35a   :  { %1424 = vst [vmem:[#allocation5 + $0xf0] sm:$0xff] %v1296_v60  ;;  %1425 = vst [vmem:[#allocation5 + $0xf8] sm:$0xff] %v1297_v27 }
 0x35b   :  { %1430 = vst [vmem:[#allocation5 + $0x120] sm:$0xff] %v1302_v4  ;;  %1431 = vst [vmem:[#allocation5 + $0x128] sm:$0xff] %v1303_v20  ;;  %v1066_v57 = vpop.permute.xlu1 %1065  ;;  %v1078_v43 = vpop.permute.xlu0 %1077 }
 0x35c   :  { %v1300_v58 = vmul.f32 %v1624_v62, %v1066_v57  ;;  %v1301_v44 = vmul.f32 %v1625_v17, %v1066_v57  ;;  %v1306_v29 = vmul.f32 %v1626_v25, %v1078_v43  ;;  %v1307_v21 = vmul.f32 %v1627_v24, %v1078_v43  ;;  %v1649_v57 = vld [vmem:[#allocation2 + $0x1d8] sm:$0xff]  ;;  %v1650_v62 = vld [vmem:[#allocation2 + $0x200] sm:$0xff]  ;;  %v1651_v17 = vld [vmem:[#allocation2 + $0x208] sm:$0xff] }
 0x35d   :  { %v1652_v24 = vld [vmem:[#allocation2 + $0x1f0] sm:$0xff] }
 0x35e   :  { %1428 = vst [vmem:[#allocation5 + $0x110] sm:$0xff] %v1300_v58  ;;  %1429 = vst [vmem:[#allocation5 + $0x118] sm:$0xff] %v1301_v44 }
 0x35f   :  { %1434 = vst [vmem:[#allocation5 + $0x140] sm:$0xff] %v1306_v29  ;;  %1435 = vst [vmem:[#allocation5 + $0x148] sm:$0xff] %v1307_v21  ;;  %v1074_v2 = vpop.permute.xlu1 %1073  ;;  %v1086_v5 = vpop.permute.xlu0 %1085 }
 0x360   :  { %v1304_v6 = vmul.f32 %v1628_v63, %v1074_v2  ;;  %v1305_v56 = vmul.f32 %v1629_v30, %v1074_v2  ;;  %v1310_v31 = vmul.f32 %v1630_v39, %v1086_v5  ;;  %v1311_v41 = vmul.f32 %v1631_v40, %v1086_v5  ;;  %v1653_v2 = vld [vmem:[#allocation2 + $0x1f8] sm:$0xff]  ;;  %v1654_v63 = vld [vmem:[#allocation2 + $0x220] sm:$0xff]  ;;  %v1655_v30 = vld [vmem:[#allocation2 + $0x228] sm:$0xff] }
 0x361   :  { %v1656_v40 = vld [vmem:[#allocation2 + $0x210] sm:$0xff] }
 0x362   :  { %1432 = vst [vmem:[#allocation5 + $0x130] sm:$0xff] %v1304_v6  ;;  %1433 = vst [vmem:[#allocation5 + $0x138] sm:$0xff] %v1305_v56 }
 0x363   :  { %1438 = vst [vmem:[#allocation5 + $0x160] sm:$0xff] %v1310_v31  ;;  %1439 = vst [vmem:[#allocation5 + $0x168] sm:$0xff] %v1311_v41  ;;  %v1082_v7 = vpop.permute.xlu1 %1081  ;;  %v1097_v32 = vpop.permute.xlu0 %1096 }
 0x364   :  { %v1308_v33 = vmul.f32 %v1632_v45, %v1082_v7  ;;  %v1309_v37 = vmul.f32 %v1633_v9, %v1082_v7  ;;  %v1314_v42 = vmul.f32 %v1634_v34, %v1097_v32  ;;  %v1315_v11 = vmul.f32 %v1635_v10, %v1097_v32  ;;  %v1657_v7 = vld [vmem:[#allocation2 + $0x218] sm:$0xff]  ;;  %v1658_v45 = vld [vmem:[#allocation2 + $0x240] sm:$0xff]  ;;  %v1659_v9 = vld [vmem:[#allocation2 + $0x248] sm:$0xff] }
 0x365   :  { %v1660_v10 = vld [vmem:[#allocation2 + $0x230] sm:$0xff] }
 0x366   :  { %1436 = vst [vmem:[#allocation5 + $0x150] sm:$0xff] %v1308_v33  ;;  %1437 = vst [vmem:[#allocation5 + $0x158] sm:$0xff] %v1309_v37 }
 0x367   :  { %1442 = vst [vmem:[#allocation5 + $0x180] sm:$0xff] %v1314_v42  ;;  %1443 = vst [vmem:[#allocation5 + $0x188] sm:$0xff] %v1315_v11  ;;  %v1090_v53 = vpop.permute.xlu1 %1089  ;;  %v1105_v47 = vpop.permute.xlu0 %1104 }
 0x368   :  { %v1312_v12 = vmul.f32 %v1636_v35, %v1090_v53  ;;  %v1313_v46 = vmul.f32 %v1637_v50, %v1090_v53  ;;  %v1318_v3 = vmul.f32 %v1638_v52, %v1105_v47  ;;  %v1319_v23 = vmul.f32 %v1639_v13, %v1105_v47  ;;  %v1661_v53 = vld [vmem:[#allocation2 + $0x238] sm:$0xff]  ;;  %v1662_v35 = vld [vmem:[#allocation2 + $0x260] sm:$0xff]  ;;  %v1663_v50 = vld [vmem:[#allocation2 + $0x268] sm:$0xff] }
 0x369   :  { %v1664_v13 = vld [vmem:[#allocation2 + $0x250] sm:$0xff] }
 0x36a   :  { %1440 = vst [vmem:[#allocation5 + $0x170] sm:$0xff] %v1312_v12  ;;  %1441 = vst [vmem:[#allocation5 + $0x178] sm:$0xff] %v1313_v46 }
 0x36b   :  { %1446 = vst [vmem:[#allocation5 + $0x1a0] sm:$0xff] %v1318_v3  ;;  %1447 = vst [vmem:[#allocation5 + $0x1a8] sm:$0xff] %v1319_v23  ;;  %v1101_v54 = vpop.permute.xlu1 %1100  ;;  %v1113_v59 = vpop.permute.xlu0 %1112 }
 0x36c   :  { %v1316_v36 = vmul.f32 %v1640_v1, %v1101_v54  ;;  %v1317_v51 = vmul.f32 %v1641_v14, %v1101_v54  ;;  %v1322_v16 = vmul.f32 %v1642_v15, %v1113_v59  ;;  %v1323_v38 = vmul.f32 %v1643_v49, %v1113_v59  ;;  %v1665_v54 = vld [vmem:[#allocation2 + $0x258] sm:$0xff]  ;;  %v1666_v1 = vld [vmem:[#allocation2 + $0x280] sm:$0xff]  ;;  %v1667_v14 = vld [vmem:[#allocation2 + $0x288] sm:$0xff] }
 0x36d   :  { %v1668_v49 = vld [vmem:[#allocation2 + $0x270] sm:$0xff] }
 0x36e   :  { %1444 = vst [vmem:[#allocation5 + $0x190] sm:$0xff] %v1316_v36  ;;  %1445 = vst [vmem:[#allocation5 + $0x198] sm:$0xff] %v1317_v51 }
 0x36f   :  { %1450 = vst [vmem:[#allocation5 + $0x1c0] sm:$0xff] %v1322_v16  ;;  %1451 = vst [vmem:[#allocation5 + $0x1c8] sm:$0xff] %v1323_v38  ;;  %v1109_v8 = vpop.permute.xlu1 %1108  ;;  %v1121_v18 = vpop.permute.xlu0 %1120 }
 0x370   :  { %v1320_v48 = vmul.f32 %v1644_v22, %v1109_v8  ;;  %v1321_v0 = vmul.f32 %v1645_v55, %v1109_v8  ;;  %v1326_v60 = vmul.f32 %v1646_v26, %v1121_v18  ;;  %v1327_v27 = vmul.f32 %v1647_v19, %v1121_v18  ;;  %v1669_v8 = vld [vmem:[#allocation2 + $0x278] sm:$0xff]  ;;  %v1670_v22 = vld [vmem:[#allocation2 + $0x2a0] sm:$0xff]  ;;  %v1671_v55 = vld [vmem:[#allocation2 + $0x2a8] sm:$0xff] }
 0x371   :  { %v1672_v19 = vld [vmem:[#allocation2 + $0x290] sm:$0xff] }
 0x372   :  { %1448 = vst [vmem:[#allocation5 + $0x1b0] sm:$0xff] %v1320_v48  ;;  %1449 = vst [vmem:[#allocation5 + $0x1b8] sm:$0xff] %v1321_v0 }
 0x373   :  { %1454 = vst [vmem:[#allocation5 + $0x1e0] sm:$0xff] %v1326_v60  ;;  %1455 = vst [vmem:[#allocation5 + $0x1e8] sm:$0xff] %v1327_v27  ;;  %v1117_v28 = vpop.permute.xlu1 %1116  ;;  %v1132_v4 = vpop.permute.xlu0 %1131 }
 0x374   :  { %v1324_v20 = vmul.f32 %v1648_v61, %v1117_v28  ;;  %v1325_v43 = vmul.f32 %v1649_v57, %v1117_v28  ;;  %v1330_v58 = vmul.f32 %v1650_v62, %v1132_v4  ;;  %v1331_v44 = vmul.f32 %v1651_v17, %v1132_v4  ;;  %v1673_v28 = vld [vmem:[#allocation2 + $0x298] sm:$0xff]  ;;  %v1674_v61 = vld [vmem:[#allocation2 + $0x2c0] sm:$0xff]  ;;  %v1675_v57 = vld [vmem:[#allocation2 + $0x2c8] sm:$0xff] }
 0x375   :  { %v1676_v17 = vld [vmem:[#allocation2 + $0x2b0] sm:$0xff] }
 0x376   :  { %1452 = vst [vmem:[#allocation5 + $0x1d0] sm:$0xff] %v1324_v20  ;;  %1453 = vst [vmem:[#allocation5 + $0x1d8] sm:$0xff] %v1325_v43 }
 0x377   :  { %1458 = vst [vmem:[#allocation5 + $0x200] sm:$0xff] %v1330_v58  ;;  %1459 = vst [vmem:[#allocation5 + $0x208] sm:$0xff] %v1331_v44  ;;  %v1125_v25 = vpop.permute.xlu1 %1124  ;;  %v1140_v29 = vpop.permute.xlu0 %1139 }
 0x378   :  { %v1328_v21 = vmul.f32 %v1652_v24, %v1125_v25  ;;  %v1329_v5 = vmul.f32 %v1653_v2, %v1125_v25  ;;  %v1334_v6 = vmul.f32 %v1654_v63, %v1140_v29  ;;  %v1335_v56 = vmul.f32 %v1655_v30, %v1140_v29  ;;  %v1677_v25 = vld [vmem:[#allocation2 + $0x2b8] sm:$0xff]  ;;  %v1678_v24 = vld [vmem:[#allocation2 + $0x2e0] sm:$0xff]  ;;  %v1679_v2 = vld [vmem:[#allocation2 + $0x2e8] sm:$0xff] }
 0x379   :  { %v1680_v30 = vld [vmem:[#allocation2 + $0x2d0] sm:$0xff] }
 0x37a   :  { %1456 = vst [vmem:[#allocation5 + $0x1f0] sm:$0xff] %v1328_v21  ;;  %1457 = vst [vmem:[#allocation5 + $0x1f8] sm:$0xff] %v1329_v5 }
 0x37b   :  { %1462 = vst [vmem:[#allocation5 + $0x220] sm:$0xff] %v1334_v6  ;;  %1463 = vst [vmem:[#allocation5 + $0x228] sm:$0xff] %v1335_v56  ;;  %v1136_v39 = vpop.permute.xlu1 %1135  ;;  %v1148_v31 = vpop.permute.xlu0 %1147 }
 0x37c   :  { %v1332_v41 = vmul.f32 %v1656_v40, %v1136_v39  ;;  %v1333_v32 = vmul.f32 %v1657_v7, %v1136_v39  ;;  %v1338_v33 = vmul.f32 %v1658_v45, %v1148_v31  ;;  %v1339_v37 = vmul.f32 %v1659_v9, %v1148_v31  ;;  %v1681_v39 = vld [vmem:[#allocation2 + $0x2d8] sm:$0xff]  ;;  %v1682_v40 = vld [vmem:[#allocation2 + $0x300] sm:$0xff]  ;;  %v1683_v7 = vld [vmem:[#allocation2 + $0x308] sm:$0xff] }
 0x37d   :  { %v1684_v9 = vld [vmem:[#allocation2 + $0x2f0] sm:$0xff] }
 0x37e   :  { %1460 = vst [vmem:[#allocation5 + $0x210] sm:$0xff] %v1332_v41  ;;  %1461 = vst [vmem:[#allocation5 + $0x218] sm:$0xff] %v1333_v32 }
 0x37f   :  { %1466 = vst [vmem:[#allocation5 + $0x240] sm:$0xff] %v1338_v33  ;;  %1467 = vst [vmem:[#allocation5 + $0x248] sm:$0xff] %v1339_v37  ;;  %v1144_v34 = vpop.permute.xlu1 %1143  ;;  %v1156_v42 = vpop.permute.xlu0 %1155 }
 0x380   :  { %v1336_v11 = vmul.f32 %v1660_v10, %v1144_v34  ;;  %v1337_v47 = vmul.f32 %v1661_v53, %v1144_v34  ;;  %v1342_v12 = vmul.f32 %v1662_v35, %v1156_v42  ;;  %v1343_v46 = vmul.f32 %v1663_v50, %v1156_v42  ;;  %v1685_v34 = vld [vmem:[#allocation2 + $0x2f8] sm:$0xff]  ;;  %v1686_v10 = vld [vmem:[#allocation2 + $0x320] sm:$0xff]  ;;  %v1687_v53 = vld [vmem:[#allocation2 + $0x328] sm:$0xff] }
 0x381   :  { %v1688_v50 = vld [vmem:[#allocation2 + $0x310] sm:$0xff] }
 0x382   :  { %1464 = vst [vmem:[#allocation5 + $0x230] sm:$0xff] %v1336_v11  ;;  %1465 = vst [vmem:[#allocation5 + $0x238] sm:$0xff] %v1337_v47 }
 0x383   :  { %1470 = vst [vmem:[#allocation5 + $0x260] sm:$0xff] %v1342_v12  ;;  %1471 = vst [vmem:[#allocation5 + $0x268] sm:$0xff] %v1343_v46  ;;  %v1152_v52 = vpop.permute.xlu1 %1151  ;;  %v1167_v3 = vpop.permute.xlu0 %1166 }
 0x384   :  { %v1340_v23 = vmul.f32 %v1664_v13, %v1152_v52  ;;  %v1341_v59 = vmul.f32 %v1665_v54, %v1152_v52  ;;  %v1346_v36 = vmul.f32 %v1666_v1, %v1167_v3  ;;  %v1347_v51 = vmul.f32 %v1667_v14, %v1167_v3  ;;  %v1689_v52 = vld [vmem:[#allocation2 + $0x318] sm:$0xff]  ;;  %v1690_v13 = vld [vmem:[#allocation2 + $0x340] sm:$0xff]  ;;  %v1691_v54 = vld [vmem:[#allocation2 + $0x348] sm:$0xff] }
 0x385   :  { %v1692_v14 = vld [vmem:[#allocation2 + $0x330] sm:$0xff] }
 0x386   :  { %1468 = vst [vmem:[#allocation5 + $0x250] sm:$0xff] %v1340_v23  ;;  %1469 = vst [vmem:[#allocation5 + $0x258] sm:$0xff] %v1341_v59 }
 0x387   :  { %1474 = vst [vmem:[#allocation5 + $0x280] sm:$0xff] %v1346_v36  ;;  %1475 = vst [vmem:[#allocation5 + $0x288] sm:$0xff] %v1347_v51  ;;  %v1160_v15 = vpop.permute.xlu1 %1159  ;;  %v1175_v16 = vpop.permute.xlu0 %1174 }
 0x388   :  { %v1344_v38 = vmul.f32 %v1668_v49, %v1160_v15  ;;  %v1345_v18 = vmul.f32 %v1669_v8, %v1160_v15  ;;  %v1350_v48 = vmul.f32 %v1670_v22, %v1175_v16  ;;  %v1351_v0 = vmul.f32 %v1671_v55, %v1175_v16  ;;  %v1693_v15 = vld [vmem:[#allocation2 + $0x338] sm:$0xff]  ;;  %v1694_v49 = vld [vmem:[#allocation2 + $0x360] sm:$0xff]  ;;  %v1695_v8 = vld [vmem:[#allocation2 + $0x368] sm:$0xff] }
 0x389   :  { %v1696_v55 = vld [vmem:[#allocation2 + $0x350] sm:$0xff] }
 0x38a   :  { %1472 = vst [vmem:[#allocation5 + $0x270] sm:$0xff] %v1344_v38  ;;  %1473 = vst [vmem:[#allocation5 + $0x278] sm:$0xff] %v1345_v18 }
 0x38b   :  { %1478 = vst [vmem:[#allocation5 + $0x2a0] sm:$0xff] %v1350_v48  ;;  %1479 = vst [vmem:[#allocation5 + $0x2a8] sm:$0xff] %v1351_v0  ;;  %v1171_v26 = vpop.permute.xlu1 %1170  ;;  %v1183_v60 = vpop.permute.xlu0 %1182 }
 0x38c   :  { %v1348_v27 = vmul.f32 %v1672_v19, %v1171_v26  ;;  %v1349_v4 = vmul.f32 %v1673_v28, %v1171_v26  ;;  %v1354_v20 = vmul.f32 %v1674_v61, %v1183_v60  ;;  %v1355_v43 = vmul.f32 %v1675_v57, %v1183_v60  ;;  %v1697_v26 = vld [vmem:[#allocation2 + $0x358] sm:$0xff]  ;;  %v1698_v19 = vld [vmem:[#allocation2 + $0x380] sm:$0xff]  ;;  %v1699_v28 = vld [vmem:[#allocation2 + $0x388] sm:$0xff] }
 0x38d   :  { %v1700_v57 = vld [vmem:[#allocation2 + $0x370] sm:$0xff] }
 0x38e   :  { %1476 = vst [vmem:[#allocation5 + $0x290] sm:$0xff] %v1348_v27  ;;  %1477 = vst [vmem:[#allocation5 + $0x298] sm:$0xff] %v1349_v4 }
 0x38f   :  { %1482 = vst [vmem:[#allocation5 + $0x2c0] sm:$0xff] %v1354_v20  ;;  %1483 = vst [vmem:[#allocation5 + $0x2c8] sm:$0xff] %v1355_v43  ;;  %v1179_v62 = vpop.permute.xlu1 %1178  ;;  %v1191_v58 = vpop.permute.xlu0 %1190 }
 0x390   :  { %v1352_v44 = vmul.f32 %v1676_v17, %v1179_v62  ;;  %v1353_v29 = vmul.f32 %v1677_v25, %v1179_v62  ;;  %v1358_v21 = vmul.f32 %v1678_v24, %v1191_v58  ;;  %v1359_v5 = vmul.f32 %v1679_v2, %v1191_v58  ;;  %v1701_v62 = vld [vmem:[#allocation2 + $0x378] sm:$0xff]  ;;  %v1702_v17 = vld [vmem:[#allocation2 + $0x3a0] sm:$0xff]  ;;  %v1703_v25 = vld [vmem:[#allocation2 + $0x3a8] sm:$0xff] }
 0x391   :  { %v1704_v2 = vld [vmem:[#allocation2 + $0x390] sm:$0xff] }
 0x392   :  { %1480 = vst [vmem:[#allocation5 + $0x2b0] sm:$0xff] %v1352_v44  ;;  %1481 = vst [vmem:[#allocation5 + $0x2b8] sm:$0xff] %v1353_v29 }
 0x393   :  { %1486 = vst [vmem:[#allocation5 + $0x2e0] sm:$0xff] %v1358_v21  ;;  %1487 = vst [vmem:[#allocation5 + $0x2e8] sm:$0xff] %v1359_v5  ;;  %v1187_v63 = vpop.permute.xlu1 %1186  ;;  %v1202_v6 = vpop.permute.xlu0 %1201 }
 0x394   :  { %v1356_v56 = vmul.f32 %v1680_v30, %v1187_v63  ;;  %v1357_v31 = vmul.f32 %v1681_v39, %v1187_v63  ;;  %v1362_v41 = vmul.f32 %v1682_v40, %v1202_v6  ;;  %v1363_v32 = vmul.f32 %v1683_v7, %v1202_v6  ;;  %v1705_v63 = vld [vmem:[#allocation2 + $0x398] sm:$0xff]  ;;  %v1706_v30 = vld [vmem:[#allocation2 + $0x3c0] sm:$0xff]  ;;  %v1707_v39 = vld [vmem:[#allocation2 + $0x3c8] sm:$0xff] }
 0x395   :  { %v1708_v7 = vld [vmem:[#allocation2 + $0x3b0] sm:$0xff] }
 0x396   :  { %1484 = vst [vmem:[#allocation5 + $0x2d0] sm:$0xff] %v1356_v56  ;;  %1485 = vst [vmem:[#allocation5 + $0x2d8] sm:$0xff] %v1357_v31 }
 0x397   :  { %1490 = vst [vmem:[#allocation5 + $0x300] sm:$0xff] %v1362_v41  ;;  %1491 = vst [vmem:[#allocation5 + $0x308] sm:$0xff] %v1363_v32  ;;  %v1195_v45 = vpop.permute.xlu1 %1194  ;;  %v1210_v33 = vpop.permute.xlu0 %1209 }
 0x398   :  { %v1360_v37 = vmul.f32 %v1684_v9, %v1195_v45  ;;  %v1361_v42 = vmul.f32 %v1685_v34, %v1195_v45  ;;  %v1366_v11 = vmul.f32 %v1686_v10, %v1210_v33  ;;  %v1367_v47 = vmul.f32 %v1687_v53, %v1210_v33  ;;  %v1709_v45 = vld [vmem:[#allocation2 + $0x3b8] sm:$0xff]  ;;  %v1710_v9 = vld [vmem:[#allocation2 + $0x3e0] sm:$0xff]  ;;  %v1711_v34 = vld [vmem:[#allocation2 + $0x3e8] sm:$0xff] }
 0x39a   :  { %1488 = vst [vmem:[#allocation5 + $0x2f0] sm:$0xff] %v1360_v37  ;;  %1489 = vst [vmem:[#allocation5 + $0x2f8] sm:$0xff] %v1361_v42 }
 0x39b   :  { %1494 = vst [vmem:[#allocation5 + $0x320] sm:$0xff] %v1366_v11  ;;  %1495 = vst [vmem:[#allocation5 + $0x328] sm:$0xff] %v1367_v47  ;;  %v1206_v35 = vpop.permute.xlu1 %1205  ;;  %v1218_v12 = vpop.permute.xlu0 %1217  ;;  %v1712_v11 = vld [vmem:[#allocation2 + $0x3d0] sm:$0xff]  ;;  %v1713_v47 = vld [vmem:[#allocation2 + $0x3d8] sm:$0xff] }
 0x39c   :  { %v1364_v46 = vmul.f32 %v1688_v50, %v1206_v35  ;;  %v1365_v3 = vmul.f32 %v1689_v52, %v1206_v35  ;;  %v1370_v23 = vmul.f32 %v1690_v13, %v1218_v12  ;;  %v1371_v59 = vmul.f32 %v1691_v54, %v1218_v12  ;;  %v1714_v50 = vld [vmem:[#allocation2 + $0x3f0] sm:$0xff]  ;;  %v1715_v52 = vld [vmem:[#allocation2 + $0x3f8] sm:$0xff] }
 0x39e   :  { %1492 = vst [vmem:[#allocation5 + $0x310] sm:$0xff] %v1364_v46  ;;  %1493 = vst [vmem:[#allocation5 + $0x318] sm:$0xff] %v1365_v3 }
 0x39f   :  { %1498 = vst [vmem:[#allocation5 + $0x340] sm:$0xff] %v1370_v23  ;;  %1499 = vst [vmem:[#allocation5 + $0x348] sm:$0xff] %v1371_v59  ;;  %v1214_v1 = vpop.permute.xlu1 %1213  ;;  %v1226_v36 = vpop.permute.xlu0 %1225 }
 0x3a0   :  { %v1368_v51 = vmul.f32 %v1692_v14, %v1214_v1  ;;  %v1369_v16 = vmul.f32 %v1693_v15, %v1214_v1  ;;  %v1374_v38 = vmul.f32 %v1694_v49, %v1226_v36  ;;  %v1375_v18 = vmul.f32 %v1695_v8, %v1226_v36 }
 0x3a2   :  { %1496 = vst [vmem:[#allocation5 + $0x330] sm:$0xff] %v1368_v51  ;;  %1497 = vst [vmem:[#allocation5 + $0x338] sm:$0xff] %v1369_v16 }
 0x3a3   :  { %1502 = vst [vmem:[#allocation5 + $0x360] sm:$0xff] %v1374_v38  ;;  %1503 = vst [vmem:[#allocation5 + $0x368] sm:$0xff] %v1375_v18  ;;  %v1222_v22 = vpop.permute.xlu1 %1221  ;;  %v1237_v48 = vpop.permute.xlu0 %1236 }
 0x3a4   :  { %v1372_v0 = vmul.f32 %v1696_v55, %v1222_v22  ;;  %v1373_v60 = vmul.f32 %v1697_v26, %v1222_v22  ;;  %v1378_v27 = vmul.f32 %v1698_v19, %v1237_v48  ;;  %v1379_v4 = vmul.f32 %v1699_v28, %v1237_v48 }
 0x3a6   :  { %1500 = vst [vmem:[#allocation5 + $0x350] sm:$0xff] %v1372_v0  ;;  %1501 = vst [vmem:[#allocation5 + $0x358] sm:$0xff] %v1373_v60 }
 0x3a7   :  { %1506 = vst [vmem:[#allocation5 + $0x380] sm:$0xff] %v1378_v27  ;;  %1507 = vst [vmem:[#allocation5 + $0x388] sm:$0xff] %v1379_v4  ;;  %v1230_v61 = vpop.permute.xlu1 %1229  ;;  %v1245_v20 = vpop.permute.xlu0 %1244 }
 0x3a8   :  { %v1376_v43 = vmul.f32 %v1700_v57, %v1230_v61  ;;  %v1377_v58 = vmul.f32 %v1701_v62, %v1230_v61  ;;  %v1382_v44 = vmul.f32 %v1702_v17, %v1245_v20  ;;  %v1383_v29 = vmul.f32 %v1703_v25, %v1245_v20 }
 0x3aa   :  { %1504 = vst [vmem:[#allocation5 + $0x370] sm:$0xff] %v1376_v43  ;;  %1505 = vst [vmem:[#allocation5 + $0x378] sm:$0xff] %v1377_v58 }
 0x3ab   :  { %1510 = vst [vmem:[#allocation5 + $0x3a0] sm:$0xff] %v1382_v44  ;;  %1511 = vst [vmem:[#allocation5 + $0x3a8] sm:$0xff] %v1383_v29  ;;  %v1241_v24 = vpop.permute.xlu1 %1240  ;;  %v1253_v21 = vpop.permute.xlu0 %1252 }
 0x3ac   :  { %v1380_v5 = vmul.f32 %v1704_v2, %v1241_v24  ;;  %v1381_v6 = vmul.f32 %v1705_v63, %v1241_v24  ;;  %v1386_v56 = vmul.f32 %v1706_v30, %v1253_v21  ;;  %v1387_v31 = vmul.f32 %v1707_v39, %v1253_v21 }
 0x3ae   :  { %1508 = vst [vmem:[#allocation5 + $0x390] sm:$0xff] %v1380_v5  ;;  %1509 = vst [vmem:[#allocation5 + $0x398] sm:$0xff] %v1381_v6 }
 0x3af   :  { %1514 = vst [vmem:[#allocation5 + $0x3c0] sm:$0xff] %v1386_v56  ;;  %1515 = vst [vmem:[#allocation5 + $0x3c8] sm:$0xff] %v1387_v31  ;;  %v1249_v40 = vpop.permute.xlu1 %1248  ;;  %v1261_v41 = vpop.permute.xlu0 %1260 }
 0x3b0   :  { %v1384_v32 = vmul.f32 %v1708_v7, %v1249_v40  ;;  %v1385_v33 = vmul.f32 %v1709_v45, %v1249_v40  ;;  %v1390_v37 = vmul.f32 %v1710_v9, %v1261_v41  ;;  %v1391_v42 = vmul.f32 %v1711_v34, %v1261_v41 }
 0x3b2   :  { %1512 = vst [vmem:[#allocation5 + $0x3b0] sm:$0xff] %v1384_v32  ;;  %1513 = vst [vmem:[#allocation5 + $0x3b8] sm:$0xff] %v1385_v33 }
 0x3b3   :  { %1518 = vst [vmem:[#allocation5 + $0x3e0] sm:$0xff] %v1390_v37  ;;  %1519 = vst [vmem:[#allocation5 + $0x3e8] sm:$0xff] %v1391_v42  ;;  %v1257_v10 = vpop.permute.xlu1 %1256 }
 0x3b4   :  { %v1388_v53 = vmul.f32 %v1712_v11, %v1257_v10  ;;  %v1389_v35 = vmul.f32 %v1713_v47, %v1257_v10 }
 0x3b6   :  { %1516 = vst [vmem:[#allocation5 + $0x3d0] sm:$0xff] %v1388_v53  ;;  %1517 = vst [vmem:[#allocation5 + $0x3d8] sm:$0xff] %v1389_v35 }
 0x3b7   :  { %v1265_v12 = vpop.permute.xlu1 %1264 }
 0x3b8   :  { %v1392_v46 = vmul.f32 %v1714_v50, %v1265_v12  ;;  %v1393_v3 = vmul.f32 %v1715_v52, %v1265_v12 }
 0x3ba   :  { %1520 = vst [vmem:[#allocation5 + $0x3f0] sm:$0xff] %v1392_v46  ;;  %1521 = vst [vmem:[#allocation5 + $0x3f8] sm:$0xff] %v1393_v3 }
 0x3bb   :  { %1747 = shalt.err (!%p1744_p9)
}
 0x3bc   :  { %1533 = dma.vmem_to_hbm [thread:$0]  %s1528_s8, 16384, %s2127_s3, [#allocation4], %s1761_s15, %s1761_s15, %s1762_s16  }
 0x3bd   :  { %1758 = dma.done.wait [#allocation4], 16384  }
 0x3be   :  { %1759 = vsyncadd [#allocation4], 4294950912 }
 0x3bf   :  { %1537 = vsyncpa [#allocation3], 1 }
 0x3c0   :  { %1538 = vsyncpa [#allocation4], 1 }

</bundles_post_ra>
